<compile_context>
chip_gen: v7x
topology: tpu7x:2x2x1
jax: 0.10.0
libtpu: 0.0.40
codegen_flags: <defaults>
</compile_context>

<pallas_src>
import jax
import jax.numpy as jnp
from jax import lax
from jax.experimental import pallas as pl
from jax.experimental.pallas import tpu as pltpu

BN_EPS = 1e-5


def _round_up(a, b):
    return ((a + b - 1) // b) * b


def _choose_tm(M):
    # Full-dim block for tiny M (always a legal block shape). Otherwise a tile
    # that is a multiple of 16 sublanes (bf16-friendly), at least 2 tiles so the
    # 'parallel' axis can feed both v7x TensorCores, capped at 512 rows
    # (mem-bound tiling sweet spot, ~85% of HBM roofline on v6e).
    if M <= 16:
        return M
    return min(512, _round_up(pl.cdiv(M, 2), 16))


# ----------------------------- Pallas kernel ---------------------------------

def _conv_tap_kernel(x_ref, w_ref, b_ref, o_ref, acc_ref):
    """One grid step: acc += x_tap @ w_tap (bf16 MXU, f32 acc); epilogue on last tap."""
    t = pl.program_id(1)

    @pl.when(t == 0)
    def _():
        acc_ref[...] = jnp.zeros_like(acc_ref)

    acc_ref[...] += jnp.dot(x_ref[0], w_ref[0],
                            preferred_element_type=jnp.float32)

    @pl.when(t == pl.num_programs(1) - 1)
    def _():
        # Lean f32 epilogue: bias + ReLU, single store (lane-dense Coutp).
        o_ref[...] = jnp.maximum(acc_ref[...] + b_ref[...], 0.0).astype(o_ref.dtype)


def conv_taps_matmul(taps, w_taps, bias):
    """taps: (T, M, Cin) bf16, w_taps: (T, Cin, Coutp) bf16, bias: (1, Coutp) f32.

    Returns relu(sum_t taps[t] @ w_taps[t] + bias) as (M, Coutp) f32.
    """
    T, M, Cin = taps.shape
    _, _, Coutp = w_taps.shape
    tm = _choose_tm(M)
    grid = (pl.cdiv(M, tm), T)          # reduction (tap) axis last
    return pl.pallas_call(
        _conv_tap_kernel,
        out_shape=jax.ShapeDtypeStruct((M, Coutp), jnp.float32),
        grid=grid,
        in_specs=[
            pl.BlockSpec((1, tm, Cin), lambda m, t: (t, m, 0)),
            pl.BlockSpec((1, Cin, Coutp), lambda m, t: (t, 0, 0)),
            pl.BlockSpec((1, Coutp), lambda m, t: (0, 0)),
        ],
        out_specs=pl.BlockSpec((tm, Coutp), lambda m, t: (m, 0)),
        scratch_shapes=[pltpu.VMEM((tm, Coutp), jnp.float32)],
        compiler_params=pltpu.CompilerParams(
            dimension_semantics=("parallel", "arbitrary"),
            vmem_limit_bytes=32 * 1024 * 1024,   # explicit budget; safe on v5e/v6e/v7x
        ),
    )(taps, w_taps, bias)


# --------------------------- conv / pool wrappers ----------------------------

def conv_bn_relu_fwd(x, p, stride, padding):
    """x: NHWC f32. Conv2d + BatchNorm(eval, folded) + ReLU via the Pallas kernel."""
    w, b = p["w"], p["b"]                                   # w: (KH, KW, Cin, Cout)
    scale = p["gamma"] * lax.rsqrt(p["var"] + BN_EPS)
    w_f = w * scale                                         # fold BN scale
    b_f = (b - p["mean"]) * scale + p["beta"]               # fold BN shift
    kh, kw, cin, cout = w.shape
    sh, sw = stride

    # Lane-dense output: pad Cout to a multiple of 128 (192->256, 320->384).
    coutp = _round_up(cout, 128)
    w_f = jnp.pad(w_f, ((0, 0), (0, 0), (0, 0), (0, coutp - cout)))
    b_f = jnp.pad(b_f, ((0, coutp - cout),))

    if padding == "same":
        ph, pw = (kh - 1) // 2, (kw - 1) // 2
        x = jnp.pad(x, ((0, 0), (ph, ph), (pw, pw), (0, 0)))
    N, H, W, _ = x.shape
    Ho = (H - kh) // sh + 1
    Wo = (W - kw) // sw + 1
    M = N * Ho * Wo

    xb = x.astype(jnp.bfloat16)                             # bf16 MXU operands
    if kh == 1 and kw == 1 and (sh, sw) == (1, 1):
        taps = xb.reshape(1, M, cin)                        # 1x1 conv: pure GEMM, no copies
    else:
        # TODO(synk): the T shifted views below are still materialized by XLA (T x
        # activation bytes, halved by bf16); removing that needs element-offset /
        # space-to-depth BlockSpecs, which strided convs don't map onto cleanly.
        views = [
            xb[:, i:i + (Ho - 1) * sh + 1:sh,
               j:j + (Wo - 1) * sw + 1:sw, :].reshape(M, cin)
            for i in range(kh) for j in range(kw)
        ]
        taps = jnp.stack(views, axis=0)                     # (T, M, Cin) bf16

    w_taps = w_f.reshape(kh * kw, cin, coutp).astype(jnp.bfloat16)
    out = conv_taps_matmul(taps, w_taps, b_f.reshape(1, coutp))
    return out[:, :cout].reshape(N, Ho, Wo, cout)


def maxpool3x3s2(x):
    """x: NHWC. MaxPool2d(kernel_size=3, stride=2), no padding.

    Fused pairwise-max tree in plain JAX (per perf review): mem-bound, fuses with
    the strided slices, reads x once and avoids the 9x HBM tap stack.
    """
    N, H, W, C = x.shape
    Ho = (H - 3) // 2 + 1
    Wo = (W - 3) // 2 + 1
    out = None
    for i in range(3):
        for j in range(3):
            tap = x[:, i:i + 2 * (Ho - 1) + 1:2, j:j + 2 * (Wo - 1) + 1:2, :]
            out = tap if out is None else jnp.maximum(out, tap)
    return out


# ------------------------------- the module ----------------------------------

def init_conv_bn(key, cin, cout, kh, kw):
    k1, k2, k3, k4, k5, k6 = jax.random.split(key, 6)
    fan_in = kh * kw * cin
    return dict(
        w=jax.random.normal(k1, (kh, kw, cin, cout), jnp.float32) / jnp.sqrt(fan_in),
        b=0.1 * jax.random.normal(k2, (cout,), jnp.float32),
        gamma=1.0 + 0.1 * jax.random.normal(k3, (cout,), jnp.float32),
        beta=0.1 * jax.random.normal(k4, (cout,), jnp.float32),
        mean=0.1 * jax.random.normal(k5, (cout,), jnp.float32),
        var=1.0 + 0.5 * jax.random.uniform(k6, (cout,), jnp.float32),
    )


def init_reduction_block_b(key, inchannels):
    ks = jax.random.split(key, 6)
    return dict(
        b3_1=init_conv_bn(ks[0], inchannels, 192, 1, 1),
        b3_2=init_conv_bn(ks[1], 192, 320, 3, 3),
        b7_1=init_conv_bn(ks[2], inchannels, 192, 1, 1),
        b7_2=init_conv_bn(ks[3], 192, 192, 1, 7),
        b7_3=init_conv_bn(ks[4], 192, 192, 7, 1),
        b7_4=init_conv_bn(ks[5], 192, 192, 3, 3),
    )


def reduction_block_b(x_nchw, params):
    x = jnp.transpose(x_nchw, (0, 2, 3, 1))                 # NCHW -> NHWC
    # branch_3x3
    y = conv_bn_relu_fwd(x, params["b3_1"], (1, 1), "same")
    b3 = conv_bn_relu_fwd(y, params["b3_2"], (2, 2), "valid")
    # branch_7x7
    y = conv_bn_relu_fwd(x, params["b7_1"], (1, 1), "same")
    y = conv_bn_relu_fwd(y, params["b7_2"], (1, 1), "same")  # (1,7) conv
    y = conv_bn_relu_fwd(y, params["b7_3"], (1, 1), "same")  # (7,1) conv
    b7 = conv_bn_relu_fwd(y, params["b7_4"], (2, 2), "valid")
    # branch_pool
    bp = maxpool3x3s2(x)
    out = jnp.concatenate([b3, b7, bp], axis=-1)             # cat over channels
    return jnp.transpose(out, (0, 3, 1, 2))                  # NHWC -> NCHW


# ------------------------------ pure-JAX reference ---------------------------
# Mirrors the kernel's numerics (bf16 operands, f32 accumulation) so the check
# validates the Pallas implementation tightly.

def _ref_conv_bn_relu(x, p, stride, padding):
    scale = p["gamma"] * lax.rsqrt(p["var"] + BN_EPS)
    w_f = (p["w"] * scale).astype(jnp.bfloat16)
    b_f = (p["b"] - p["mean"]) * scale + p["beta"]
    pad = "SAME" if padding == "same" else "VALID"
    y = lax.conv_general_dilated(
        x.astype(jnp.bfloat16), w_f, window_strides=stride, padding=pad,
        dimension_numbers=("NHWC", "HWIO", "NHWC"),
        preferred_element_type=jnp.float32)
    return jnp.maximum(y + b_f, 0.0)


def _ref_forward(x_nchw, params):
    x = jnp.transpose(x_nchw, (0, 2, 3, 1))
    y = _ref_conv_bn_relu(x, params["b3_1"], (1, 1), "same")
    b3 = _ref_conv_bn_relu(y, params["b3_2"], (2, 2), "valid")
    y = _ref_conv_bn_relu(x, params["b7_1"], (1, 1), "same")
    y = _ref_conv_bn_relu(y, params["b7_2"], (1, 1), "same")
    y = _ref_conv_bn_relu(y, params["b7_3"], (1, 1), "same")
    b7 = _ref_conv_bn_relu(y, params["b7_4"], (2, 2), "valid")
    bp = lax.reduce_window(x, -jnp.inf, lax.max,
                           (1, 3, 3, 1), (1, 2, 2, 1), "VALID")
    out = jnp.concatenate([b3, b7, bp], axis=-1)
    return jnp.transpose(out, (0, 3, 1, 2))


# ----------------------------------- main ------------------------------------

if __name__ == "__main__":
    key = jax.random.PRNGKey(0)
    k_x, k_p = jax.random.split(key)

    N, Cin, H, W = 2, 8, 9, 9                                # small shapes
    x = jax.random.normal(k_x, (N, Cin, H, W), jnp.float32)
    params = init_reduction_block_b(k_p, Cin)

    out = jax.block_until_ready(jax.jit(reduction_block_b)(x, params))

    Ho = (H - 3) // 2 + 1
    assert out.shape == (N, 320 + 192 + Cin, Ho, Ho), out.shape
    assert bool(jnp.all(jnp.isfinite(out)))

    ref = jax.block_until_ready(jax.jit(_ref_forward)(x, params))
    max_err = float(jnp.max(jnp.abs(out - ref)))
    assert jnp.allclose(out, ref, rtol=2e-3, atol=2e-3), max_err

    print("KERNEL_OK")
</pallas_src>

<mosaic_0001>
module attributes {stable_mosaic.version = 11 : i64} {
  func.func @_conv_tap_kernel(%arg0: i32, %arg1: i32, %arg2: memref<1x96x8xbf16, #tpu.memory_space<vmem>>, %arg3: memref<1x8x256xbf16, #tpu.memory_space<vmem>>, %arg4: memref<1x256xf32, #tpu.memory_space<vmem>>, %arg5: memref<96x256xf32, #tpu.memory_space<vmem>>, %arg6: memref<96x256xf32, #tpu.memory_space<vmem>>) attributes {dimension_semantics = [#tpu.dimension_semantics<parallel>, #tpu.dimension_semantics<arbitrary>], iteration_bounds = array<i64: 2, 1>, scalar_prefetch = 0 : i64, scratch_operands = 1 : i64, tpu.core_type = #tpu.core_type<tc>, window_params = [{transform_indices = @transform_0, window_bounds = array<i64: 1, 96, 8>}, {transform_indices = @transform_1, window_bounds = array<i64: 1, 8, 256>}, {pipeline_mode = #tpu.pipeline_mode<synchronous>, transform_indices = @transform_2, window_bounds = array<i64: 1, 256>}, {transform_indices = @transform_3, window_bounds = array<i64: 96, 256>}]} {
    %c0_i32 = arith.constant 0 : i32
    %0 = arith.cmpi eq, %arg1, %c0_i32 : i32
    %1 = arith.extui %0 : i1 to i32
    %c0_i32_0 = arith.constant 0 : i32
    %2 = arith.cmpi ne, %1, %c0_i32_0 : i32
    scf.if %2 {
      %cst_12 = arith.constant 0.000000e+00 : f32
      %14 = vector.broadcast %cst_12 : f32 to vector<96x256xf32>
      %c0_13 = arith.constant 0 : index
      %c0_14 = arith.constant 0 : index
      %15 = vector.load %arg6[%c0_13, %c0_14] : memref<96x256xf32, #tpu.memory_space<vmem>>, vector<96x256xf32>
      tpu.vector_store %arg6[%c0_13, %c0_14], %14 {strides = array<i32>} : memref<96x256xf32, #tpu.memory_space<vmem>>, vector<96x256xf32>,
    } else {
    }
    %c0 = arith.constant 0 : index
    %c0_1 = arith.constant 0 : index
    %3 = vector.load %arg6[%c0, %c0_1] : memref<96x256xf32, #tpu.memory_space<vmem>>, vector<96x256xf32>
    %c0_2 = arith.constant 0 : index
    %c0_3 = arith.constant 0 : index
    %c0_4 = arith.constant 0 : index
    %4 = vector.load %arg2[%c0_2, %c0_3, %c0_4] : memref<1x96x8xbf16, #tpu.memory_space<vmem>>, vector<1x96x8xbf16>
    %5 = vector.shape_cast %4 : vector<1x96x8xbf16> to vector<96x8xbf16>
    %c0_5 = arith.constant 0 : index
    %c0_6 = arith.constant 0 : index
    %c0_7 = arith.constant 0 : index
    %6 = vector.load %arg3[%c0_5, %c0_6, %c0_7] : memref<1x8x256xbf16, #tpu.memory_space<vmem>>, vector<1x8x256xbf16>
    %7 = vector.shape_cast %6 : vector<1x8x256xbf16> to vector<8x256xbf16>
    %cst = arith.constant dense<0.000000e+00> : vector<96x256xf32>
    %8 = tpu.matmul %5, %7, %cst {dimension_numbers = #tpu.dot_dimension_numbers<[1], [0], [0], [1], [0, 0, 1, 1], [], []>} : vector<96x8xbf16>, vector<8x256xbf16>, vector<96x256xf32> -> vector<96x256xf32>
    %9 = arith.addf %3, %8 : vector<96x256xf32>
    %c0_8 = arith.constant 0 : index
    %c0_9 = arith.constant 0 : index
    %10 = vector.load %arg6[%c0_8, %c0_9] : memref<96x256xf32, #tpu.memory_space<vmem>>, vector<96x256xf32>
    tpu.vector_store %arg6[%c0_8, %c0_9], %9 {strides = array<i32>} : memref<96x256xf32, #tpu.memory_space<vmem>>, vector<96x256xf32>,
    %c0_i32_10 = arith.constant 0 : i32
    %11 = arith.cmpi eq, %arg1, %c0_i32_10 : i32
    %12 = arith.extui %11 : i1 to i32
    %c0_i32_11 = arith.constant 0 : i32
    %13 = arith.cmpi ne, %12, %c0_i32_11 : i32
    scf.if %13 {
      %c0_12 = arith.constant 0 : index
      %c0_13 = arith.constant 0 : index
      %14 = vector.load %arg6[%c0_12, %c0_13] : memref<96x256xf32, #tpu.memory_space<vmem>>, vector<96x256xf32>
      %c0_14 = arith.constant 0 : index
      %c0_15 = arith.constant 0 : index
      %15 = vector.load %arg4[%c0_14, %c0_15] : memref<1x256xf32, #tpu.memory_space<vmem>>, vector<1x256xf32>
      %16 = vector.broadcast %15 : vector<1x256xf32> to vector<96x256xf32>
      %17 = arith.addf %14, %16 : vector<96x256xf32>
      %cst_16 = arith.constant 0.000000e+00 : f32
      %18 = vector.broadcast %cst_16 : f32 to vector<96x256xf32>
      %19 = arith.maximumf %17, %18 : vector<96x256xf32>
      %c0_17 = arith.constant 0 : index
      %c0_18 = arith.constant 0 : index
      %20 = vector.load %arg5[%c0_17, %c0_18] : memref<96x256xf32, #tpu.memory_space<vmem>>, vector<96x256xf32>
      tpu.vector_store %arg5[%c0_17, %c0_18], %19 {strides = array<i32>} : memref<96x256xf32, #tpu.memory_space<vmem>>, vector<96x256xf32>,
    } else {
    }
    return
  }
  func.func @transform_0(%arg0: i32, %arg1: i32) -> (i32, i32, i32) {
    %c0_i32 = arith.constant 0 : i32
    %c0_i32_0 = arith.constant 0 : i32
    return %arg1, %arg0, %c0_i32 : i32, i32, i32
  }
  func.func @transform_1(%arg0: i32, %arg1: i32) -> (i32, i32, i32) {
    %c0_i32 = arith.constant 0 : i32
    %c0_i32_0 = arith.constant 0 : i32
    %c0_i32_1 = arith.constant 0 : i32
    return %arg1, %c0_i32, %c0_i32_0 : i32, i32, i32
  }
  func.func @transform_2(%arg0: i32, %arg1: i32) -> (i32, i32) {
    %c0_i32 = arith.constant 0 : i32
    %c0_i32_0 = arith.constant 0 : i32
    %c0_i32_1 = arith.constant 0 : i32
    return %c0_i32, %c0_i32_0 : i32, i32
  }
  func.func @transform_3(%arg0: i32, %arg1: i32) -> (i32, i32) {
    %c0_i32 = arith.constant 0 : i32
    %c0_i32_0 = arith.constant 0 : i32
    return %arg0, %c0_i32 : i32, i32
  }
}

module attributes {stable_mosaic.version = 11 : i64} {
  func.func @_conv_tap_kernel(%arg0: i32, %arg1: i32, %arg2: memref<1x96x192xbf16, #tpu.memory_space<vmem>>, %arg3: memref<1x192x256xbf16, #tpu.memory_space<vmem>>, %arg4: memref<1x256xf32, #tpu.memory_space<vmem>>, %arg5: memref<96x256xf32, #tpu.memory_space<vmem>>, %arg6: memref<96x256xf32, #tpu.memory_space<vmem>>) attributes {dimension_semantics = [#tpu.dimension_semantics<parallel>, #tpu.dimension_semantics<arbitrary>], iteration_bounds = array<i64: 2, 7>, scalar_prefetch = 0 : i64, scratch_operands = 1 : i64, tpu.core_type = #tpu.core_type<tc>, window_params = [{transform_indices = @transform_0, window_bounds = array<i64: 1, 96, 192>}, {transform_indices = @transform_1, window_bounds = array<i64: 1, 192, 256>}, {pipeline_mode = #tpu.pipeline_mode<synchronous>, transform_indices = @transform_2, window_bounds = array<i64: 1, 256>}, {transform_indices = @transform_3, window_bounds = array<i64: 96, 256>}]} {
    %c0_i32 = arith.constant 0 : i32
    %0 = arith.cmpi eq, %arg1, %c0_i32 : i32
    %1 = arith.extui %0 : i1 to i32
    %c0_i32_0 = arith.constant 0 : i32
    %2 = arith.cmpi ne, %1, %c0_i32_0 : i32
    scf.if %2 {
      %cst_11 = arith.constant 0.000000e+00 : f32
      %14 = vector.broadcast %cst_11 : f32 to vector<96x256xf32>
      %c0_12 = arith.constant 0 : index
      %c0_13 = arith.constant 0 : index
      %15 = vector.load %arg6[%c0_12, %c0_13] : memref<96x256xf32, #tpu.memory_space<vmem>>, vector<96x256xf32>
      tpu.vector_store %arg6[%c0_12, %c0_13], %14 {strides = array<i32>} : memref<96x256xf32, #tpu.memory_space<vmem>>, vector<96x256xf32>,
    } else {
    }
    %c0 = arith.constant 0 : index
    %c0_1 = arith.constant 0 : index
    %3 = vector.load %arg6[%c0, %c0_1] : memref<96x256xf32, #tpu.memory_space<vmem>>, vector<96x256xf32>
    %c0_2 = arith.constant 0 : index
    %c0_3 = arith.constant 0 : index
    %c0_4 = arith.constant 0 : index
    %4 = vector.load %arg2[%c0_2, %c0_3, %c0_4] : memref<1x96x192xbf16, #tpu.memory_space<vmem>>, vector<1x96x192xbf16>
    %5 = vector.shape_cast %4 : vector<1x96x192xbf16> to vector<96x192xbf16>
    %c0_5 = arith.constant 0 : index
    %c0_6 = arith.constant 0 : index
    %c0_7 = arith.constant 0 : index
    %6 = vector.load %arg3[%c0_5, %c0_6, %c0_7] : memref<1x192x256xbf16, #tpu.memory_space<vmem>>, vector<1x192x256xbf16>
    %7 = vector.shape_cast %6 : vector<1x192x256xbf16> to vector<192x256xbf16>
    %cst = arith.constant dense<0.000000e+00> : vector<96x256xf32>
    %8 = tpu.matmul %5, %7, %cst {dimension_numbers = #tpu.dot_dimension_numbers<[1], [0], [0], [1], [0, 0, 1, 1], [], []>} : vector<96x192xbf16>, vector<192x256xbf16>, vector<96x256xf32> -> vector<96x256xf32>
    %9 = arith.addf %3, %8 : vector<96x256xf32>
    %c0_8 = arith.constant 0 : index
    %c0_9 = arith.constant 0 : index
    %10 = vector.load %arg6[%c0_8, %c0_9] : memref<96x256xf32, #tpu.memory_space<vmem>>, vector<96x256xf32>
    tpu.vector_store %arg6[%c0_8, %c0_9], %9 {strides = array<i32>} : memref<96x256xf32, #tpu.memory_space<vmem>>, vector<96x256xf32>,
    %c6_i32 = arith.constant 6 : i32
    %11 = arith.cmpi eq, %arg1, %c6_i32 : i32
    %12 = arith.extui %11 : i1 to i32
    %c0_i32_10 = arith.constant 0 : i32
    %13 = arith.cmpi ne, %12, %c0_i32_10 : i32
    scf.if %13 {
      %c0_11 = arith.constant 0 : index
      %c0_12 = arith.constant 0 : index
      %14 = vector.load %arg6[%c0_11, %c0_12] : memref<96x256xf32, #tpu.memory_space<vmem>>, vector<96x256xf32>
      %c0_13 = arith.constant 0 : index
      %c0_14 = arith.constant 0 : index
      %15 = vector.load %arg4[%c0_13, %c0_14] : memref<1x256xf32, #tpu.memory_space<vmem>>, vector<1x256xf32>
      %16 = vector.broadcast %15 : vector<1x256xf32> to vector<96x256xf32>
      %17 = arith.addf %14, %16 : vector<96x256xf32>
      %cst_15 = arith.constant 0.000000e+00 : f32
      %18 = vector.broadcast %cst_15 : f32 to vector<96x256xf32>
      %19 = arith.maximumf %17, %18 : vector<96x256xf32>
      %c0_16 = arith.constant 0 : index
      %c0_17 = arith.constant 0 : index
      %20 = vector.load %arg5[%c0_16, %c0_17] : memref<96x256xf32, #tpu.memory_space<vmem>>, vector<96x256xf32>
      tpu.vector_store %arg5[%c0_16, %c0_17], %19 {strides = array<i32>} : memref<96x256xf32, #tpu.memory_space<vmem>>, vector<96x256xf32>,
    } else {
    }
    return
  }
  func.func @transform_0(%arg0: i32, %arg1: i32) -> (i32, i32, i32) {
    %c0_i32 = arith.constant 0 : i32
    %c0_i32_0 = arith.constant 0 : i32
    return %arg1, %arg0, %c0_i32 : i32, i32, i32
  }
  func.func @transform_1(%arg0: i32, %arg1: i32) -> (i32, i32, i32) {
    %c0_i32 = arith.constant 0 : i32
    %c0_i32_0 = arith.constant 0 : i32
    %c0_i32_1 = arith.constant 0 : i32
    return %arg1, %c0_i32, %c0_i32_0 : i32, i32, i32
  }
  func.func @transform_2(%arg0: i32, %arg1: i32) -> (i32, i32) {
    %c0_i32 = arith.constant 0 : i32
    %c0_i32_0 = arith.constant 0 : i32
    %c0_i32_1 = arith.constant 0 : i32
    return %c0_i32, %c0_i32_0 : i32, i32
  }
  func.func @transform_3(%arg0: i32, %arg1: i32) -> (i32, i32) {
    %c0_i32 = arith.constant 0 : i32
    %c0_i32_0 = arith.constant 0 : i32
    return %arg0, %c0_i32 : i32, i32
  }
}

module attributes {stable_mosaic.version = 11 : i64} {
  func.func @_conv_tap_kernel(%arg0: i32, %arg1: i32, %arg2: memref<1x16x192xbf16, #tpu.memory_space<vmem>>, %arg3: memref<1x192x256xbf16, #tpu.memory_space<vmem>>, %arg4: memref<1x256xf32, #tpu.memory_space<vmem>>, %arg5: memref<16x256xf32, #tpu.memory_space<vmem>>, %arg6: memref<16x256xf32, #tpu.memory_space<vmem>>) attributes {dimension_semantics = [#tpu.dimension_semantics<parallel>, #tpu.dimension_semantics<arbitrary>], iteration_bounds = array<i64: 2, 9>, scalar_prefetch = 0 : i64, scratch_operands = 1 : i64, tpu.core_type = #tpu.core_type<tc>, window_params = [{transform_indices = @transform_0, window_bounds = array<i64: 1, 16, 192>}, {transform_indices = @transform_1, window_bounds = array<i64: 1, 192, 256>}, {pipeline_mode = #tpu.pipeline_mode<synchronous>, transform_indices = @transform_2, window_bounds = array<i64: 1, 256>}, {transform_indices = @transform_3, window_bounds = array<i64: 16, 256>}]} {
    %c0_i32 = arith.constant 0 : i32
    %0 = arith.cmpi eq, %arg1, %c0_i32 : i32
    %1 = arith.extui %0 : i1 to i32
    %c0_i32_0 = arith.constant 0 : i32
    %2 = arith.cmpi ne, %1, %c0_i32_0 : i32
    scf.if %2 {
      %cst_11 = arith.constant 0.000000e+00 : f32
      %14 = vector.broadcast %cst_11 : f32 to vector<16x256xf32>
      %c0_12 = arith.constant 0 : index
      %c0_13 = arith.constant 0 : index
      %15 = vector.load %arg6[%c0_12, %c0_13] : memref<16x256xf32, #tpu.memory_space<vmem>>, vector<16x256xf32>
      tpu.vector_store %arg6[%c0_12, %c0_13], %14 {strides = array<i32>} : memref<16x256xf32, #tpu.memory_space<vmem>>, vector<16x256xf32>,
    } else {
    }
    %c0 = arith.constant 0 : index
    %c0_1 = arith.constant 0 : index
    %3 = vector.load %arg6[%c0, %c0_1] : memref<16x256xf32, #tpu.memory_space<vmem>>, vector<16x256xf32>
    %c0_2 = arith.constant 0 : index
    %c0_3 = arith.constant 0 : index
    %c0_4 = arith.constant 0 : index
    %4 = vector.load %arg2[%c0_2, %c0_3, %c0_4] : memref<1x16x192xbf16, #tpu.memory_space<vmem>>, vector<1x16x192xbf16>
    %5 = vector.shape_cast %4 : vector<1x16x192xbf16> to vector<16x192xbf16>
    %c0_5 = arith.constant 0 : index
    %c0_6 = arith.constant 0 : index
    %c0_7 = arith.constant 0 : index
    %6 = vector.load %arg3[%c0_5, %c0_6, %c0_7] : memref<1x192x256xbf16, #tpu.memory_space<vmem>>, vector<1x192x256xbf16>
    %7 = vector.shape_cast %6 : vector<1x192x256xbf16> to vector<192x256xbf16>
    %cst = arith.constant dense<0.000000e+00> : vector<16x256xf32>
    %8 = tpu.matmul %5, %7, %cst {dimension_numbers = #tpu.dot_dimension_numbers<[1], [0], [0], [1], [0, 0, 1, 1], [], []>} : vector<16x192xbf16>, vector<192x256xbf16>, vector<16x256xf32> -> vector<16x256xf32>
    %9 = arith.addf %3, %8 : vector<16x256xf32>
    %c0_8 = arith.constant 0 : index
    %c0_9 = arith.constant 0 : index
    %10 = vector.load %arg6[%c0_8, %c0_9] : memref<16x256xf32, #tpu.memory_space<vmem>>, vector<16x256xf32>
    tpu.vector_store %arg6[%c0_8, %c0_9], %9 {strides = array<i32>} : memref<16x256xf32, #tpu.memory_space<vmem>>, vector<16x256xf32>,
    %c8_i32 = arith.constant 8 : i32
    %11 = arith.cmpi eq, %arg1, %c8_i32 : i32
    %12 = arith.extui %11 : i1 to i32
    %c0_i32_10 = arith.constant 0 : i32
    %13 = arith.cmpi ne, %12, %c0_i32_10 : i32
    scf.if %13 {
      %c0_11 = arith.constant 0 : index
      %c0_12 = arith.constant 0 : index
      %14 = vector.load %arg6[%c0_11, %c0_12] : memref<16x256xf32, #tpu.memory_space<vmem>>, vector<16x256xf32>
      %c0_13 = arith.constant 0 : index
      %c0_14 = arith.constant 0 : index
      %15 = vector.load %arg4[%c0_13, %c0_14] : memref<1x256xf32, #tpu.memory_space<vmem>>, vector<1x256xf32>
      %16 = vector.broadcast %15 : vector<1x256xf32> to vector<16x256xf32>
      %17 = arith.addf %14, %16 : vector<16x256xf32>
      %cst_15 = arith.constant 0.000000e+00 : f32
      %18 = vector.broadcast %cst_15 : f32 to vector<16x256xf32>
      %19 = arith.maximumf %17, %18 : vector<16x256xf32>
      %c0_16 = arith.constant 0 : index
      %c0_17 = arith.constant 0 : index
      %20 = vector.load %arg5[%c0_16, %c0_17] : memref<16x256xf32, #tpu.memory_space<vmem>>, vector<16x256xf32>
      tpu.vector_store %arg5[%c0_16, %c0_17], %19 {strides = array<i32>} : memref<16x256xf32, #tpu.memory_space<vmem>>, vector<16x256xf32>,
    } else {
    }
    return
  }
  func.func @transform_0(%arg0: i32, %arg1: i32) -> (i32, i32, i32) {
    %c0_i32 = arith.constant 0 : i32
    %c0_i32_0 = arith.constant 0 : i32
    return %arg1, %arg0, %c0_i32 : i32, i32, i32
  }
  func.func @transform_1(%arg0: i32, %arg1: i32) -> (i32, i32, i32) {
    %c0_i32 = arith.constant 0 : i32
    %c0_i32_0 = arith.constant 0 : i32
    %c0_i32_1 = arith.constant 0 : i32
    return %arg1, %c0_i32, %c0_i32_0 : i32, i32, i32
  }
  func.func @transform_2(%arg0: i32, %arg1: i32) -> (i32, i32) {
    %c0_i32 = arith.constant 0 : i32
    %c0_i32_0 = arith.constant 0 : i32
    %c0_i32_1 = arith.constant 0 : i32
    return %c0_i32, %c0_i32_0 : i32, i32
  }
  func.func @transform_3(%arg0: i32, %arg1: i32) -> (i32, i32) {
    %c0_i32 = arith.constant 0 : i32
    %c0_i32_0 = arith.constant 0 : i32
    return %arg0, %c0_i32 : i32, i32
  }
}

module attributes {stable_mosaic.version = 11 : i64} {
  func.func @_conv_tap_kernel(%arg0: i32, %arg1: i32, %arg2: memref<1x16x192xbf16, #tpu.memory_space<vmem>>, %arg3: memref<1x192x384xbf16, #tpu.memory_space<vmem>>, %arg4: memref<1x384xf32, #tpu.memory_space<vmem>>, %arg5: memref<16x384xf32, #tpu.memory_space<vmem>>, %arg6: memref<16x384xf32, #tpu.memory_space<vmem>>) attributes {dimension_semantics = [#tpu.dimension_semantics<parallel>, #tpu.dimension_semantics<arbitrary>], iteration_bounds = array<i64: 2, 9>, scalar_prefetch = 0 : i64, scratch_operands = 1 : i64, tpu.core_type = #tpu.core_type<tc>, window_params = [{transform_indices = @transform_0, window_bounds = array<i64: 1, 16, 192>}, {transform_indices = @transform_1, window_bounds = array<i64: 1, 192, 384>}, {pipeline_mode = #tpu.pipeline_mode<synchronous>, transform_indices = @transform_2, window_bounds = array<i64: 1, 384>}, {transform_indices = @transform_3, window_bounds = array<i64: 16, 384>}]} {
    %c0_i32 = arith.constant 0 : i32
    %0 = arith.cmpi eq, %arg1, %c0_i32 : i32
    %1 = arith.extui %0 : i1 to i32
    %c0_i32_0 = arith.constant 0 : i32
    %2 = arith.cmpi ne, %1, %c0_i32_0 : i32
    scf.if %2 {
      %cst_11 = arith.constant 0.000000e+00 : f32
      %14 = vector.broadcast %cst_11 : f32 to vector<16x384xf32>
      %c0_12 = arith.constant 0 : index
      %c0_13 = arith.constant 0 : index
      %15 = vector.load %arg6[%c0_12, %c0_13] : memref<16x384xf32, #tpu.memory_space<vmem>>, vector<16x384xf32>
      tpu.vector_store %arg6[%c0_12, %c0_13], %14 {strides = array<i32>} : memref<16x384xf32, #tpu.memory_space<vmem>>, vector<16x384xf32>,
    } else {
    }
    %c0 = arith.constant 0 : index
    %c0_1 = arith.constant 0 : index
    %3 = vector.load %arg6[%c0, %c0_1] : memref<16x384xf32, #tpu.memory_space<vmem>>, vector<16x384xf32>
    %c0_2 = arith.constant 0 : index
    %c0_3 = arith.constant 0 : index
    %c0_4 = arith.constant 0 : index
    %4 = vector.load %arg2[%c0_2, %c0_3, %c0_4] : memref<1x16x192xbf16, #tpu.memory_space<vmem>>, vector<1x16x192xbf16>
    %5 = vector.shape_cast %4 : vector<1x16x192xbf16> to vector<16x192xbf16>
    %c0_5 = arith.constant 0 : index
    %c0_6 = arith.constant 0 : index
    %c0_7 = arith.constant 0 : index
    %6 = vector.load %arg3[%c0_5, %c0_6, %c0_7] : memref<1x192x384xbf16, #tpu.memory_space<vmem>>, vector<1x192x384xbf16>
    %7 = vector.shape_cast %6 : vector<1x192x384xbf16> to vector<192x384xbf16>
    %cst = arith.constant dense<0.000000e+00> : vector<16x384xf32>
    %8 = tpu.matmul %5, %7, %cst {dimension_numbers = #tpu.dot_dimension_numbers<[1], [0], [0], [1], [0, 0, 1, 1], [], []>} : vector<16x192xbf16>, vector<192x384xbf16>, vector<16x384xf32> -> vector<16x384xf32>
    %9 = arith.addf %3, %8 : vector<16x384xf32>
    %c0_8 = arith.constant 0 : index
    %c0_9 = arith.constant 0 : index
    %10 = vector.load %arg6[%c0_8, %c0_9] : memref<16x384xf32, #tpu.memory_space<vmem>>, vector<16x384xf32>
    tpu.vector_store %arg6[%c0_8, %c0_9], %9 {strides = array<i32>} : memref<16x384xf32, #tpu.memory_space<vmem>>, vector<16x384xf32>,
    %c8_i32 = arith.constant 8 : i32
    %11 = arith.cmpi eq, %arg1, %c8_i32 : i32
    %12 = arith.extui %11 : i1 to i32
    %c0_i32_10 = arith.constant 0 : i32
    %13 = arith.cmpi ne, %12, %c0_i32_10 : i32
    scf.if %13 {
      %c0_11 = arith.constant 0 : index
      %c0_12 = arith.constant 0 : index
      %14 = vector.load %arg6[%c0_11, %c0_12] : memref<16x384xf32, #tpu.memory_space<vmem>>, vector<16x384xf32>
      %c0_13 = arith.constant 0 : index
      %c0_14 = arith.constant 0 : index
      %15 = vector.load %arg4[%c0_13, %c0_14] : memref<1x384xf32, #tpu.memory_space<vmem>>, vector<1x384xf32>
      %16 = vector.broadcast %15 : vector<1x384xf32> to vector<16x384xf32>
      %17 = arith.addf %14, %16 : vector<16x384xf32>
      %cst_15 = arith.constant 0.000000e+00 : f32
      %18 = vector.broadcast %cst_15 : f32 to vector<16x384xf32>
      %19 = arith.maximumf %17, %18 : vector<16x384xf32>
      %c0_16 = arith.constant 0 : index
      %c0_17 = arith.constant 0 : index
      %20 = vector.load %arg5[%c0_16, %c0_17] : memref<16x384xf32, #tpu.memory_space<vmem>>, vector<16x384xf32>
      tpu.vector_store %arg5[%c0_16, %c0_17], %19 {strides = array<i32>} : memref<16x384xf32, #tpu.memory_space<vmem>>, vector<16x384xf32>,
    } else {
    }
    return
  }
  func.func @transform_0(%arg0: i32, %arg1: i32) -> (i32, i32, i32) {
    %c0_i32 = arith.constant 0 : i32
    %c0_i32_0 = arith.constant 0 : i32
    return %arg1, %arg0, %c0_i32 : i32, i32, i32
  }
  func.func @transform_1(%arg0: i32, %arg1: i32) -> (i32, i32, i32) {
    %c0_i32 = arith.constant 0 : i32
    %c0_i32_0 = arith.constant 0 : i32
    %c0_i32_1 = arith.constant 0 : i32
    return %arg1, %c0_i32, %c0_i32_0 : i32, i32, i32
  }
  func.func @transform_2(%arg0: i32, %arg1: i32) -> (i32, i32) {
    %c0_i32 = arith.constant 0 : i32
    %c0_i32_0 = arith.constant 0 : i32
    %c0_i32_1 = arith.constant 0 : i32
    return %c0_i32, %c0_i32_0 : i32, i32
  }
  func.func @transform_3(%arg0: i32, %arg1: i32) -> (i32, i32) {
    %c0_i32 = arith.constant 0 : i32
    %c0_i32_0 = arith.constant 0 : i32
    return %arg0, %c0_i32 : i32, i32
  }
}

</mosaic_0001>

<bundles_post_ra>
// kernel: reduction_block_b.8
= control target key start
LH: loop header
LB: loop body
LE: loop exit
PB: predicated region body
PF: predicated region fallthrough
CT: control target
= control target key end

     0   :  { %s1138_s12 = smov 0   ;;  %s1140_s13 = smov 0   ;;  %s1384_s0 = inlined_call_operand.vmem [shape: bf16[1,162,8], index: 0, kind: input, shape index: {}]   ;;  %s1385_s1 = inlined_call_operand.vmem [shape: bf16[1,8,256], index: 1, kind: input, shape index: {}]   ;;  %s1386_s2 = inlined_call_operand.vmem [shape: f32[1,256], index: 2, kind: input, shape index: {}]   ;;  %s1387_s3 = inlined_call_operand.vmem [shape: f32[162,256], index: 3, kind: output, shape index: {}]  }
   0x1   :  { %s1142_s14 = smov 0   ;;  %s1144_s15 = smov 0  }
   0x2   :  { %s1146_s16 = smov 0  }
   0x3 LB: > { %s852_s17 = sadd.s32 4294967295, %s1083_s16   ;;  %s25_s18 = sadd.s32 1, %s1079_s15  ;;  %s1083_s16 = sphi %s1146_s16, %s13_s16   ;;  %s1079_s15 = sphi %s1144_s15, %s1396_s15   ;;  %s1075_s14 = sphi %s1142_s14, %s1395_s14   ;;  %s1071_s13 = sphi %s1140_s13, %s1394_s13   ;;  %s1067_s12 = sphi %s1138_s12, %s1393_s12  }
   0x4   : > { %p27_p0 = scmp.ge.s32.totalorder %s25_s18, 2  ;;  %s107_s19 = sadd.s32 1, %s1071_s13 }
   0x5   : > { %p117_p1 = scmp.ne.s32.totalorder %s1071_s13, %s1067_s12  ;;  %p118_p2 = scmp.eq.s32.totalorder %s852_s17, 1 }
   0x6   : > { %s1398_s18 = smov (%p27_p0, %s25_s18), 0  ;;  %p857_p4 = scmp.ge.s32.totalorder %s1083_s16, 1 }
   0x7   : > { %p1170_p3 = por %p118_p2, %p117_p1  ;;  %s104_s21 = ssub.s32 %s1079_s15, %s1398_s18 }
   0x8   : > { %p174_p5 = scmp.lt.s32.totalorder %s1083_s16, 3  ;;  %p105_p6 = scmp.eq.s32.totalorder %s104_s21, 0 }
   0xa   : > { %p175_p7 = pnand %p857_p4, %p174_p5 }
   0xb   : > { %s1179_s22 = scalar_select %p105_p6, %s1071_s13, %s107_s19  }
   0xc   : > { %178 = sbr.rel (%p175_p7) target bundleno = 324 (0x144), region = 32  ;;  %v304_v0 = vld [vmem:[%s1385_s1] sm:$0xff] (!%p175_p7)  ;;  %vm359_vm0 = vcmask (!%p175_p7), 1043456   ;;  %v1117_v3 = vmov (!%p175_p7), 0   ;;  %vm340_vm1 = vcmask (!%p175_p7), 64512   ;;  %v536_v11 = vlaneseq (!%p175_p7)  ;;  %s207_s6 = sand.u32 (!%p175_p7), 1, %s1067_s12  }
   0xd   : > { %s1185_s25 = smul.u32 (!%p175_p7), 12, %s1075_s14  ;;  %v866_v1 = vcombine.high (!%p175_p7), %v304_v0, %v304_v0  ;;  %v865_v2 = vcombine.low (!%p175_p7), %v304_v0, %v304_v0  ;;  %398 = vmatprep.mubr.bf16.mxu0 (!%p175_p7), %v1117_v3  ;;  %428 = vmatprep.mubr.bf16.mxu1 (!%p175_p7), %v1117_v3  ;;  %v534_v14 = vld [vmem:[%s1386_s2] sm:$0x3] (!%p175_p7) }
   0xe   : > { %v537_v12 = vshrl.u32 (!%p175_p7), %v536_v11, 7  ;;  %s894_s7 = smul.u32 (!%p175_p7), 192, %s207_s6 }
   0xf   : > { %p217_p8 = scmp.lt.s32.totalorder (!%p175_p7), %s1185_s25, 20  ;;  %867 = vmatprep.subr.msk.bf16.mxu0 (!%p175_p7), %vm359_vm0, %v866_v1  ;;  %892 = vmatprep.subr.msk.bf16.mxu1 (!%p175_p7), %vm359_vm0, %v866_v1  ;;  %v361_v4 = vsel (!%p175_p7), %vm359_vm0, %v865_v2, 0 }
  0x10   : > { %367 = vmatpush1.bf16.msra.mxu0 (!%p175_p7), %v361_v4  ;;  %893 = vmatpush1.bf16.msra.mxu1 (!%p175_p7), %v361_v4  ;;  %v538_v13 = vsub.s32 (!%p175_p7), 0, %v537_v12  ;;  %v542_v15 = vsub.s32 (!%p175_p7), 1, %v537_v12  ;;  %s1213_s8 = scalar_lea.vmem (!%p175_p7), [#allocation3], %s894_s7  }
  0x12   : > { %v1202_v16 = vrot.slane (!%p175_p7), %v534_v14, %v538_v13  ;;  %v1204_v17 = vrot.slane (!%p175_p7), %v534_v14, %v542_v15 }
  0x13   : > { %s218_s26 = scalar_select %p217_p8, %s1185_s25, 20 }
  0x14   : > { %s626_s9 = ssub.s32 (%p1170_p3), 21, %s1185_s25  ;;  %s891_s10 = smul.u32 (%p1170_p3), 192, %s1075_s14 }
  0x15   : > { %s858_s27 = sshll.u32 %s218_s26, 2  ;;  %p627_p9 = scmp.lt.s32.totalorder (%p1170_p3), %s626_s9, 12 }
  0x16   : > { %s222_s30 = scalar_lea.vmem %s1384_s0, %s858_s27  ;;  %s1263_s17 = scalar_lea.vmem (%p1170_p3), %s1387_s3, %s891_s10  }
  0x17   : > { %v1003_v5 = vld [vmem:[%s222_s30] sm:$0xff]   ;;  %v1004_v6 = vld [vmem:[%s222_s30 + $0x18] sm:$0xff]   ;;  %v1005_v7 = vld [vmem:[%s222_s30 + $0x8] sm:$0xff]  }
  0x18   : > { %868 = vmatmul.mubr.msk.bf16.vlgmr.msra.gmra.mrb[0].mxu0 %vm340_vm1, %v1003_v5  ;;  %871 = vmatmul.mubr.msk.bf16.vlgmr.msra.gmra.mrb[0].mxu1 %vm340_vm1, %v1004_v6  ;;  %v1006_v8 = vld [vmem:[%s222_s30 + $0x20] sm:$0xff]   ;;  %v1007_v9 = vld [vmem:[%s222_s30 + $0x10] sm:$0xff]   ;;  %v1008_v10 = vld [vmem:[%s222_s30 + $0x28] sm:$0xff]  }
  0x19   : > { %408 = vmatprep.mubr.bf16.mxu0 %v1117_v3  ;;  %438 = vmatprep.mubr.bf16.mxu1 %v1117_v3 }
  0x20   : > { %869 = vmatmul.mubr.msk.bf16.gmra.mrb[4].mxu0 %vm340_vm1, %v1005_v7  ;;  %872 = vmatmul.mubr.msk.bf16.gmra.mrb[4].mxu1 %vm340_vm1, %v1006_v8 }
  0x21   : > { %418 = vmatprep.mubr.bf16.mxu0 %v1117_v3  ;;  %448 = vmatprep.mubr.bf16.mxu1 %v1117_v3 }
  0x28   : > { %870 = vmatmul.mubr.msk.bf16.gmra.mrb[8].mxu0 %vm340_vm1, %v1007_v9  ;;  %873 = vmatmul.mubr.msk.bf16.gmra.mrb[8].mxu1 %vm340_vm1, %v1008_v10 }
  0xeb   : > { %v400_v18 = vpop.f32.mrb[0].mxu0  ;;  %v430_v20 = vpop.f32.mrb[0].mxu1 }
  0xec   : > { %v546_v19 = vadd.f32 %v1202_v16, %v400_v18  ;;  %v402_v21 = vpop.f32.mrb[1].mxu0  ;;  %v558_v22 = vadd.f32 %v1202_v16, %v430_v20  ;;  %v432_v24 = vpop.f32.mrb[1].mxu1 }
  0xed   : > { %v547_v23 = vadd.f32 %v1204_v17, %v402_v21  ;;  %v404_v25 = vpop.f32.mrb[2].mxu0  ;;  %v559_v27 = vadd.f32 %v1204_v17, %v432_v24  ;;  %v434_v29 = vpop.f32.mrb[2].mxu1 }
  0xee   : > { %v570_v26 = vmax.f32 %v546_v19, 0.0  ;;  %v548_v28 = vadd.f32 %v1202_v16, %v404_v25  ;;  %v406_v30 = vpop.f32.mrb[3].mxu0  ;;  %v582_v31 = vmax.f32 %v558_v22, 0.0  ;;  %v560_v33 = vadd.f32 %v1202_v16, %v434_v29  ;;  %v436_v35 = vpop.f32.mrb[3].mxu1 }
  0xef   : > { %v571_v32 = vmax.f32 %v547_v23, 0.0  ;;  %v549_v34 = vadd.f32 %v1204_v17, %v406_v30  ;;  %v583_v36 = vmax.f32 %v559_v27, 0.0  ;;  %v561_v38 = vadd.f32 %v1204_v17, %v436_v35 }
  0xf0   : > { %594 = vst [vmem:[%s1213_s8] sm:$0xff] %v570_v26  ;;  %v572_v37 = vmax.f32 %v548_v28, 0.0  ;;  %606 = vst [vmem:[%s1213_s8 + $0x60] sm:$0xff] %v582_v31  ;;  %v584_v39 = vmax.f32 %v560_v33, 0.0 }
  0xf1   : > { %595 = vst [vmem:[%s1213_s8 + $0x8] sm:$0xff] %v571_v32  ;;  %v573_v40 = vmax.f32 %v549_v34, 0.0  ;;  %607 = vst [vmem:[%s1213_s8 + $0x68] sm:$0xff] %v583_v36  ;;  %v585_v41 = vmax.f32 %v561_v38, 0.0 }
  0xf2   : > { %596 = vst [vmem:[%s1213_s8 + $0x10] sm:$0xff] %v572_v37  ;;  %608 = vst [vmem:[%s1213_s8 + $0x70] sm:$0xff] %v584_v39 }
  0xf3   : > { %597 = vst [vmem:[%s1213_s8 + $0x18] sm:$0xff] %v573_v40  ;;  %v410_v42 = vpop.f32.mrb[4].mxu0  ;;  %609 = vst [vmem:[%s1213_s8 + $0x78] sm:$0xff] %v585_v41  ;;  %v440_v44 = vpop.f32.mrb[4].mxu1 }
  0xf4   : > { %v550_v43 = vadd.f32 %v1202_v16, %v410_v42  ;;  %v412_v45 = vpop.f32.mrb[5].mxu0  ;;  %v562_v46 = vadd.f32 %v1202_v16, %v440_v44  ;;  %v442_v48 = vpop.f32.mrb[5].mxu1 }
  0xf5   : > { %v551_v47 = vadd.f32 %v1204_v17, %v412_v45  ;;  %v414_v49 = vpop.f32.mrb[6].mxu0  ;;  %v563_v51 = vadd.f32 %v1204_v17, %v442_v48  ;;  %v444_v53 = vpop.f32.mrb[6].mxu1 }
  0xf6   : > { %v574_v50 = vmax.f32 %v550_v43, 0.0  ;;  %v552_v52 = vadd.f32 %v1202_v16, %v414_v49  ;;  %v416_v54 = vpop.f32.mrb[7].mxu0  ;;  %v586_v55 = vmax.f32 %v562_v46, 0.0  ;;  %v564_v57 = vadd.f32 %v1202_v16, %v444_v53  ;;  %v446_v59 = vpop.f32.mrb[7].mxu1 }
  0xf7   : > { %v575_v56 = vmax.f32 %v551_v47, 0.0  ;;  %v553_v58 = vadd.f32 %v1204_v17, %v416_v54  ;;  %v587_v60 = vmax.f32 %v563_v51, 0.0  ;;  %v565_v62 = vadd.f32 %v1204_v17, %v446_v59 }
  0xf8   : > { %598 = vst [vmem:[%s1213_s8 + $0x20] sm:$0xff] %v574_v50  ;;  %v576_v61 = vmax.f32 %v552_v52, 0.0  ;;  %610 = vst [vmem:[%s1213_s8 + $0x80] sm:$0xff] %v586_v55  ;;  %v588_v63 = vmax.f32 %v564_v57, 0.0 }
  0xf9   : > { %599 = vst [vmem:[%s1213_s8 + $0x28] sm:$0xff] %v575_v56  ;;  %v577_v0 = vmax.f32 %v553_v58, 0.0  ;;  %611 = vst [vmem:[%s1213_s8 + $0x88] sm:$0xff] %v587_v60  ;;  %v589_v1 = vmax.f32 %v565_v62, 0.0 }
  0xfa   : > { %600 = vst [vmem:[%s1213_s8 + $0x30] sm:$0xff] %v576_v61  ;;  %612 = vst [vmem:[%s1213_s8 + $0x90] sm:$0xff] %v588_v63 }
  0xfb   : > { %601 = vst [vmem:[%s1213_s8 + $0x38] sm:$0xff] %v577_v0  ;;  %v420_v2 = vpop.f32.mrb[8].mxu0  ;;  %613 = vst [vmem:[%s1213_s8 + $0x98] sm:$0xff] %v589_v1  ;;  %v450_v4 = vpop.f32.mrb[8].mxu1 }
  0xfc   : > { %v554_v3 = vadd.f32 %v1202_v16, %v420_v2  ;;  %v422_v5 = vpop.f32.mrb[9].mxu0  ;;  %v566_v6 = vadd.f32 %v1202_v16, %v450_v4  ;;  %v452_v8 = vpop.f32.mrb[9].mxu1 }
  0xfd   : > { %v555_v7 = vadd.f32 %v1204_v17, %v422_v5  ;;  %v424_v9 = vpop.f32.mrb[10].mxu0  ;;  %v567_v11 = vadd.f32 %v1204_v17, %v452_v8  ;;  %v454_v13 = vpop.f32.mrb[10].mxu1  ;;  %624 = sbr.rel (!%p1170_p3) target bundleno = 324 (0x144), region = 44 }
  0xfe   : > { %v578_v10 = vmax.f32 %v554_v3, 0.0  ;;  %v556_v12 = vadd.f32 %v1202_v16, %v424_v9  ;;  %v426_v14 = vpop.f32.mrb[11].mxu0  ;;  %v590_v15 = vmax.f32 %v566_v6, 0.0  ;;  %v568_v19 = vadd.f32 %v1202_v16, %v454_v13  ;;  %v456_v21 = vpop.f32.mrb[11].mxu1 }
  0xff   : > { %v579_v18 = vmax.f32 %v555_v7, 0.0  ;;  %v557_v20 = vadd.f32 %v1204_v17, %v426_v14  ;;  %v591_v22 = vmax.f32 %v567_v11, 0.0  ;;  %v569_v24 = vadd.f32 %v1204_v17, %v456_v21 }
 0x100   : > { %602 = vst [vmem:[%s1213_s8 + $0x40] sm:$0xff] %v578_v10  ;;  %v580_v23 = vmax.f32 %v556_v12, 0.0  ;;  %614 = vst [vmem:[%s1213_s8 + $0xa0] sm:$0xff] %v590_v15  ;;  %v592_v25 = vmax.f32 %v568_v19, 0.0 }
 0x101   : > { %603 = vst [vmem:[%s1213_s8 + $0x48] sm:$0xff] %v579_v18  ;;  %v581_v26 = vmax.f32 %v557_v20, 0.0  ;;  %615 = vst [vmem:[%s1213_s8 + $0xa8] sm:$0xff] %v591_v22  ;;  %v593_v27 = vmax.f32 %v569_v24, 0.0 }
 0x102   : > { %604 = vst [vmem:[%s1213_s8 + $0x50] sm:$0xff] %v580_v23  ;;  %616 = vst [vmem:[%s1213_s8 + $0xb0] sm:$0xff] %v592_v25 }
 0x103   : > { %605 = vst [vmem:[%s1213_s8 + $0x58] sm:$0xff] %v581_v26  ;;  %617 = vst [vmem:[%s1213_s8 + $0xb8] sm:$0xff] %v593_v27 }
 0x104   : > { %s1400_s9 = smov (!%p627_p9, %s626_s9), 12 }
 0x105   : > { %s888_s19 = sshll.u32 %s1400_s9, 8 }
 0x106   : > { %p879_p10 = scmp.eq.s32.totalorder %s888_s19, 0 }
 0x107   : > { %1009 = sdivrem.u32 (!%p879_p10), %s1400_s9, 12 }
 0x108   : > { %637 = sbr.rel (%p879_p10) target bundleno = 324 (0x144), region = 48 }
 0x110   : > { %s1269_s20 = spop.drf %1009 }
 0x111   : > { %p880_p11 = scmp.le.s32.totalorder %s1269_s20, 0 }
 0x112   : > { %s1389_s14 = smov (!%p880_p11), %s1263_s17  ;;  %s1390_s21 = smov (!%p880_p11), %s1213_s8 }
 0x113   : > { %791 = sbr.rel (%p880_p11) target bundleno = 295 (0x127), region = 99  ;;  %s1278_s23 = smov (!%p880_p11), 0  }
 0x114   : > { %s1280_s24 = smov (!%p880_p11), 0  }
 0x11a LB: >> { %v651_v16 = vld [vmem:[%s1091_s21] sm:$0xff]  ;;  %v653_v17 = vld [vmem:[%s1091_s21 + $0x10] sm:$0xff]  ;;  %s699_s25 = sadd.s32 1, %s1095_s23  ;;  %v675_v38 = vld [vmem:[%s1091_s21 + $0x8] sm:$0xff]  ;;  %s645_s24 = sadd.s32 1, %s1099_s24   ;;  %s1099_s24 = sphi %s1280_s24, %s645_s24   ;;  %s1095_s23 = sphi %s1278_s23, %s1392_s23   ;;  %s1091_s21 = sphi %s1390_s21, %s704_s21   ;;  %s1087_s14 = sphi %s1389_s14, %s1391_s14  }
 0x11b   : >> { %v655_v28 = vld [vmem:[%s1091_s21 + $0x20] sm:$0xff]  ;;  %652 = vst [vmem:[%s1087_s14] sm:$0xff] %v651_v16  ;;  %654 = vst [vmem:[%s1087_s14 + $0x10] sm:$0xff] %v653_v17  ;;  %v657_v29 = vld [vmem:[%s1091_s21 + $0x30] sm:$0xff]  ;;  %p700_p12 = scmp.ge.s32.totalorder %s699_s25, %s1269_s20  ;;  %p644_p13 = scmp.ge.s32.totalorder %s645_s24, %s1269_s20 }
 0x11c   : >> { %656 = vst [vmem:[%s1087_s14 + $0x20] sm:$0xff] %v655_v28  ;;  %v659_v30 = vld [vmem:[%s1091_s21 + $0x40] sm:$0xff]  ;;  %v661_v31 = vld [vmem:[%s1091_s21 + $0x50] sm:$0xff]  ;;  %658 = vst [vmem:[%s1087_s14 + $0x30] sm:$0xff] %v657_v29 }
 0x11d   : >> { %660 = vst [vmem:[%s1087_s14 + $0x40] sm:$0xff] %v659_v30  ;;  %662 = vst [vmem:[%s1087_s14 + $0x50] sm:$0xff] %v661_v31  ;;  %v663_v32 = vld [vmem:[%s1091_s21 + $0x60] sm:$0xff]  ;;  %v665_v33 = vld [vmem:[%s1091_s21 + $0x70] sm:$0xff]  ;;  %s1402_s25 = smov (%p700_p12, %s699_s25), 0 }
 0x11e   : >> { %v667_v34 = vld [vmem:[%s1091_s21 + $0x80] sm:$0xff]  ;;  %664 = vst [vmem:[%s1087_s14 + $0x60] sm:$0xff] %v663_v32  ;;  %666 = vst [vmem:[%s1087_s14 + $0x70] sm:$0xff] %v665_v33  ;;  %v669_v35 = vld [vmem:[%s1091_s21 + $0x90] sm:$0xff]  ;;  %s702_s26 = smul.u32 192, %s1402_s25  ;;  %s1392_s23 = smov %s1402_s25 }
 0x11f   : >> { %668 = vst [vmem:[%s1087_s14 + $0x80] sm:$0xff] %v667_v34  ;;  %v671_v36 = vld [vmem:[%s1091_s21 + $0xa0] sm:$0xff]  ;;  %v673_v37 = vld [vmem:[%s1091_s21 + $0xb0] sm:$0xff]  ;;  %670 = vst [vmem:[%s1087_s14 + $0x90] sm:$0xff] %v669_v35 }
 0x120   : >> { %672 = vst [vmem:[%s1087_s14 + $0xa0] sm:$0xff] %v671_v36  ;;  %674 = vst [vmem:[%s1087_s14 + $0xb0] sm:$0xff] %v673_v37  ;;  %v677_v39 = vld [vmem:[%s1091_s21 + $0x18] sm:$0xff]  ;;  %v679_v40 = vld [vmem:[%s1091_s21 + $0x28] sm:$0xff]  ;;  %s705_s27 = scalar_lea.vmem %s1263_s17, %s702_s26   ;;  %647 = sbr.rel (!%p644_p13) target bundleno = 282 (0x11a), region = 105 }
 0x121   : >> { %676 = vst [vmem:[%s1087_s14 + $0x8] sm:$0xff] %v675_v38  ;;  %678 = vst [vmem:[%s1087_s14 + $0x18] sm:$0xff] %v677_v39  ;;  %v681_v41 = vld [vmem:[%s1091_s21 + $0x38] sm:$0xff]  ;;  %v683_v42 = vld [vmem:[%s1091_s21 + $0x48] sm:$0xff] }
 0x122   : >> { %680 = vst [vmem:[%s1087_s14 + $0x28] sm:$0xff] %v679_v40  ;;  %v685_v43 = vld [vmem:[%s1091_s21 + $0x58] sm:$0xff]  ;;  %682 = vst [vmem:[%s1087_s14 + $0x38] sm:$0xff] %v681_v41  ;;  %v687_v44 = vld [vmem:[%s1091_s21 + $0x68] sm:$0xff] }
 0x123   : >> { %684 = vst [vmem:[%s1087_s14 + $0x48] sm:$0xff] %v683_v42  ;;  %686 = vst [vmem:[%s1087_s14 + $0x58] sm:$0xff] %v685_v43  ;;  %v689_v45 = vld [vmem:[%s1091_s21 + $0x78] sm:$0xff]  ;;  %v691_v46 = vld [vmem:[%s1091_s21 + $0x88] sm:$0xff] }
 0x124   : >> { %688 = vst [vmem:[%s1087_s14 + $0x68] sm:$0xff] %v687_v44  ;;  %690 = vst [vmem:[%s1087_s14 + $0x78] sm:$0xff] %v689_v45  ;;  %v693_v47 = vld [vmem:[%s1091_s21 + $0x98] sm:$0xff]  ;;  %v695_v48 = vld [vmem:[%s1091_s21 + $0xa8] sm:$0xff] }
 0x125   : >> { %692 = vst [vmem:[%s1087_s14 + $0x88] sm:$0xff] %v691_v46  ;;  %v697_v49 = vld [vmem:[%s1091_s21 + $0xb8] sm:$0xff]  ;;  %s704_s21 = scalar_lea.vmem %s1213_s8, %s702_s26 [#allocation3]   ;;  %694 = vst [vmem:[%s1087_s14 + $0x98] sm:$0xff] %v693_v47 }
 0x126   : >> { %696 = vst [vmem:[%s1087_s14 + $0xa8] sm:$0xff] %v695_v48  ;;  %698 = vst [vmem:[%s1087_s14 + $0xb8] sm:$0xff] %v697_v49  ;;  %s1391_s14 = smov %s705_s27 }
 0x127 PF: > { %1011 = sdivrem.u32 %s1400_s9, 12 }
 0x128   : > { %s881_s28 = smul.u32 192, %s1269_s20 }
 0x12a   : > { %s1360_s29 = scalar_lea.vmem %s1213_s8, %s881_s28 [#allocation3]   ;;  %s1363_s30 = scalar_lea.vmem %s1263_s17, %s881_s28  }
 0x130   : > { %s1012_s4 = spop.drf %1011 }
 0x131   : > { %p883_p0 = scmp.le.s32.totalorder %s1012_s4, 0 }
 0x132   : > { %s1101_s5 = smov (!%p883_p0), %s1363_s30   ;;  %s1105_s6 = smov (!%p883_p0), %s1360_s29  }
 0x133   : > { %805 = sbr.rel (%p883_p0) target bundleno = 324 (0x144), region = 110  ;;  %s1109_s7 = smov (!%p883_p0), 0  }
 0x134   : > { %s1113_s10 = smov (!%p883_p0), 0  }
 0x13a LB: >> { %v722_v50 = vld [vmem:[%s1107_s6] sm:$0xff]  ;;  %v724_v51 = vld [vmem:[%s1107_s6 + $0x8] sm:$0xff]  ;;  %s726_s8 = sadd.s32 1, %s1111_s7  ;;  %s716_s10 = sadd.s32 1, %s1115_s10   ;;  %s1115_s10 = sphi %s1113_s10, %s716_s10   ;;  %s1111_s7 = sphi %s1109_s7, %s1110_s7   ;;  %s1107_s6 = sphi %s1105_s6, %s731_s6   ;;  %s1103_s5 = sphi %s1101_s5, %s732_s5  }
 0x13b   : >> { %723 = vst [vmem:[%s1103_s5] sm:$0xff] %v722_v50  ;;  %725 = vst [vmem:[%s1103_s5 + $0x8] sm:$0xff] %v724_v51  ;;  %p727_p1 = scmp.ge.s32.totalorder %s726_s8, %s1012_s4  ;;  %p715_p2 = scmp.ge.s32.totalorder %s716_s10, %s1012_s4 }
 0x13d   : >> { %s1404_s8 = smov (%p727_p1, %s726_s8), 0  ;;  %718 = sbr.rel (!%p715_p2) target bundleno = 314 (0x13a), region = 116 }
 0x13e   : >> { %s884_s9 = sshll.u32 %s1404_s8, 4  ;;  %s1110_s7 = smov %s1404_s8  }
 0x13f   : >> { %s731_s6 = scalar_lea.vmem %s1360_s29, %s884_s9 [#allocation3]   ;;  %s732_s5 = scalar_lea.vmem %s1363_s30, %s884_s9  }
 0x144 PF: > { %s13_s16 = sadd.s32 1, %s1083_s16   ;;  %s1393_s12 = smov %s1071_s13 }
 0x145   : > { %p10_p3 = scmp.ge.s32.totalorder %s13_s16, 4   ;;  %s1394_s13 = smov %s1179_s22 }
 0x146   : > { %s1395_s14 = smov %s1079_s15  ;;  %s1396_s15 = smov %s1398_s18 }
 0x147   :  { %12 = sbr.rel (!%p10_p3) target bundleno = 3 (0x3), region = 127 }

// kernel: reduction_block_b.9
= control target key start
LH: loop header
LB: loop body
LE: loop exit
PB: predicated region body
PF: predicated region fallthrough
CT: control target
= control target key end

     0   :  { %s1437_s12 = smov 0   ;;  %s1439_s13 = smov 0   ;;  %s1743_s0 = inlined_call_operand.vmem [shape: bf16[7,162,192], index: 0, kind: input, shape index: {}]   ;;  %s1744_s1 = inlined_call_operand.vmem [shape: bf16[7,192,256], index: 1, kind: input, shape index: {}]   ;;  %s1745_s2 = inlined_call_operand.vmem [shape: f32[1,256], index: 2, kind: input, shape index: {}]   ;;  %s1746_s3 = inlined_call_operand.vmem [shape: f32[162,256], index: 3, kind: output, shape index: {}]  }
   0x1   :  { %s1441_s14 = smov 0   ;;  %s1443_s15 = smov 0  }
   0x2   :  { %s1445_s16 = smov 0   ;;  %s1447_s17 = smov 0  }
   0x3   :  { %s1449_s18 = smov 0  }
   0x4 LB: > { %s22_s19 = sadd.s32 1, %s1374_s16  ;;  %s25_s20 = sadd.s32 1, %s1378_s17  ;;  %s1382_s18 = sphi %s1449_s18, %s13_s18   ;;  %s1378_s17 = sphi %s1447_s17, %s1757_s17   ;;  %s1374_s16 = sphi %s1445_s16, %s1756_s16   ;;  %s1370_s15 = sphi %s1443_s15, %s1755_s15   ;;  %s1366_s14 = sphi %s1441_s14, %s1754_s14   ;;  %s1362_s13 = sphi %s1439_s13, %s1753_s13   ;;  %s1358_s12 = sphi %s1437_s12, %s1752_s12  }
   0x5   : > { %p23_p0 = scmp.ge.s32.totalorder %s22_s19, 7  ;;  %s1019_s21 = sadd.s32 4294967295, %s1382_s18  }
   0x6   : > { %p117_p1 = scmp.ne.s32.totalorder %s1362_s13, %s1358_s12  ;;  %p118_p2 = scmp.eq.s32.totalorder %s1019_s21, 13 }
   0x7   : > { %s1759_s19 = smov (%p23_p0, %s22_s19), 0  ;;  %s1761_s20 = smov (!%p23_p0, %s25_s20), %s1378_s17 }
   0x8   : > { %p1023_p3 = scmp.ge.s32.totalorder %s1382_s18, 1  ;;  %p27_p4 = scmp.ge.s32.totalorder %s1761_s20, 2 }
   0x9   : > { %p177_p5 = scmp.lt.s32.totalorder %s1382_s18, 15  ;;  %p1479_p6 = por %p118_p2, %p117_p1 }
   0xa   : > { %s1763_s20 = smov (%p27_p4, %s1761_s20), 0  ;;  %s107_s24 = sadd.s32 1, %s1362_s13 }
   0xb   : > { %p178_p7 = pnand %p1023_p3, %p177_p5  ;;  %s104_s23 = ssub.s32 %s1378_s17, %s1763_s20 }
   0xc   : > { %p105_p8 = scmp.eq.s32.totalorder %s104_s23, 0  ;;  %s212_s26 = sand.u32 (!%p178_p7), 1, %s1358_s12  }
   0xd   : > { %181 = sbr.rel (%p178_p7) target bundleno = 402 (0x192), region = 32  ;;  %p221_p9 = scmp.lt.s32.totalorder (!%p178_p7), %s1366_s14, 6 }
   0xe   : > { %s1489_s25 = scalar_select %p105_p8, %s1362_s13, %s107_s24  }
   0xf   : > { %s1492_s27 = smul.u32 (!%p178_p7), 12, %s1370_s15  ;;  %p1027_p11 = scmp.ne.s32.totalorder (!%p178_p7), %s1366_s14, 0 }
  0x10   : > { %s1113_s28 = smul.u32 (!%p178_p7), 192, %s212_s26 }
  0x11   : > { %p223_p10 = scmp.lt.s32.totalorder (!%p178_p7), %s1492_s27, 20 }
  0x12   : > { %s1508_s24 = scalar_lea.vmem (!%p178_p7), [#allocation3], %s1113_s28  }
  0x14   : > { %s222_s29 = scalar_select %p221_p9, %s1366_s14, 6 }
  0x15   : > { %s224_s30 = scalar_select %p223_p10, %s1492_s27, 20 }
  0x16   : > { %s1114_s4 = smul.u32 42, %s222_s29  ;;  %v1416_v0 = vmov (!%p1027_p11), 0.0  }
  0x17   : > { %s1024_s5 = sshll.u32 %s224_s30, 1  ;;  %s1115_s6 = smul.u32 192, %s222_s29  ;;  %252 = vst [vmem:[#allocation2] sm:$0xff] (!%p1027_p11), %v1416_v0  ;;  %253 = vst [vmem:[#allocation2 + $0x8] sm:$0xff] (!%p1027_p11), %v1416_v0 }
  0x18   : > { %s227_s7 = sadd.s32 %s1114_s4, %s1024_s5  ;;  %251 = sbr.rel (%p1027_p11) target bundleno = 35 (0x23), region = 36  ;;  %254 = vst [vmem:[#allocation2 + $0x10] sm:$0xff] (!%p1027_p11), %v1416_v0  ;;  %255 = vst [vmem:[#allocation2 + $0x18] sm:$0xff] (!%p1027_p11), %v1416_v0 }
  0x19   : > { %s1025_s8 = sshll.u32 %s227_s7, 2  ;;  %s1501_s11 = scalar_lea.vmem %s1744_s1, %s1115_s6  ;;  %256 = vst [vmem:[#allocation2 + $0x20] sm:$0xff] (!%p1027_p11), %v1416_v0  ;;  %257 = vst [vmem:[#allocation2 + $0x28] sm:$0xff] (!%p1027_p11), %v1416_v0 }
  0x1a   : > { %s1506_s23 = scalar_lea.vmem %s1743_s0, %s1025_s8  ;;  %258 = vst [vmem:[#allocation2 + $0x30] sm:$0xff] (!%p1027_p11), %v1416_v0  ;;  %259 = vst [vmem:[#allocation2 + $0x38] sm:$0xff] (!%p1027_p11), %v1416_v0 }
  0x1b   : > { %260 = vst [vmem:[#allocation2 + $0x40] sm:$0xff] (!%p1027_p11), %v1416_v0  ;;  %261 = vst [vmem:[#allocation2 + $0x48] sm:$0xff] (!%p1027_p11), %v1416_v0 }
  0x1c   : > { %262 = vst [vmem:[#allocation2 + $0x50] sm:$0xff] (!%p1027_p11), %v1416_v0  ;;  %263 = vst [vmem:[#allocation2 + $0x58] sm:$0xff] (!%p1027_p11), %v1416_v0 }
  0x1d   : > { %264 = vst [vmem:[#allocation2 + $0x60] sm:$0xff] (!%p1027_p11), %v1416_v0  ;;  %265 = vst [vmem:[#allocation2 + $0x68] sm:$0xff] (!%p1027_p11), %v1416_v0 }
  0x1e   : > { %266 = vst [vmem:[#allocation2 + $0x70] sm:$0xff] (!%p1027_p11), %v1416_v0  ;;  %267 = vst [vmem:[#allocation2 + $0x78] sm:$0xff] (!%p1027_p11), %v1416_v0 }
  0x1f   : > { %268 = vst [vmem:[#allocation2 + $0x80] sm:$0xff] %v1416_v0  ;;  %269 = vst [vmem:[#allocation2 + $0x88] sm:$0xff] %v1416_v0 }
  0x20   : > { %270 = vst [vmem:[#allocation2 + $0x90] sm:$0xff] %v1416_v0  ;;  %271 = vst [vmem:[#allocation2 + $0x98] sm:$0xff] %v1416_v0 }
  0x21   : > { %272 = vst [vmem:[#allocation2 + $0xa0] sm:$0xff] %v1416_v0  ;;  %273 = vst [vmem:[#allocation2 + $0xa8] sm:$0xff] %v1416_v0 }
  0x22   : > { %274 = vst [vmem:[#allocation2 + $0xb0] sm:$0xff] %v1416_v0  ;;  %275 = vst [vmem:[#allocation2 + $0xb8] sm:$0xff] %v1416_v0 }
  0x23 PF: > { %v1238_v1 = vld [vmem:[%s1501_s11 + $0x4] ss:$8 sps:$4 sm:$0xff]   ;;  %v1240_v2 = vld [vmem:[%s1501_s11] ss:$8 sps:$4 sm:$0xff]   ;;  %v1241_v3 = vld [vmem:[%s1501_s11 + $0x14] ss:$8 sps:$4 sm:$0xff]  }
  0x24   : > { %529 = vmatprep.subr.bf16.mxu0 %v1238_v1  ;;  %1089 = vmatprep.subr.bf16.mxu1 %v1238_v1  ;;  %v1243_v4 = vld [vmem:[%s1501_s11 + $0x10] ss:$8 sps:$4 sm:$0xff]   ;;  %v1244_v5 = vld [vmem:[%s1501_s11 + $0x24] ss:$8 sps:$4 sm:$0xff]   ;;  %v1246_v6 = vld [vmem:[%s1501_s11 + $0x20] ss:$8 sps:$4 sm:$0xff]  }
  0x25   : > { %530 = vmatpush1.bf16.msra.mxu0 %v1240_v2  ;;  %1101 = vmatpush1.bf16.msra.mxu1 %v1240_v2  ;;  %v1247_v7 = vld [vmem:[%s1501_s11 + $0x34] ss:$8 sps:$4 sm:$0xff]   ;;  %v1249_v8 = vld [vmem:[%s1501_s11 + $0x30] ss:$8 sps:$4 sm:$0xff]   ;;  %v1250_v9 = vld [vmem:[%s1501_s11 + $0x44] ss:$8 sps:$4 sm:$0xff]  }
  0x26   : > { %531 = vmatprep.subr.bf16.mxu0 %v1241_v3  ;;  %1090 = vmatprep.subr.bf16.mxu1 %v1241_v3  ;;  %v1252_v10 = vld [vmem:[%s1501_s11 + $0x40] ss:$8 sps:$4 sm:$0xff]   ;;  %v1253_v11 = vld [vmem:[%s1501_s11 + $0x54] ss:$8 sps:$4 sm:$0xff]   ;;  %v1276_v12 = vld [vmem:[%s1506_s23 + $0x4] ss:$8 sps:$4 sm:$0xff]  }
  0x27   : > { %vm510_vm0 = vcmask 523264   ;;  %v1279_v13 = vld [vmem:[%s1506_s23 + $0x34] ss:$8 sps:$4 sm:$0xff]   ;;  %v1255_v14 = vld [vmem:[%s1501_s11 + $0x50] ss:$8 sps:$4 sm:$0xff]   ;;  %v276_v37 = vld [vmem:[#allocation2] sm:$0xff] }
  0x28   : > { %v1256_v15 = vld [vmem:[%s1501_s11 + $0x64] ss:$8 sps:$4 sm:$0xff]   ;;  %1064 = vmatprep.mubr.msk.bf16.mxu0 %vm510_vm0, %v1276_v12  ;;  %1067 = vmatprep.mubr.msk.bf16.mxu1 %vm510_vm0, %v1279_v13  ;;  %v1258_v16 = vld [vmem:[%s1501_s11 + $0x60] ss:$8 sps:$4 sm:$0xff]   ;;  %v1259_v17 = vld [vmem:[%s1501_s11 + $0x74] ss:$8 sps:$4 sm:$0xff]  }
  0x29   : > { %532 = vmatpush1.bf16.msra.mxu0 %v1243_v4  ;;  %1102 = vmatpush1.bf16.msra.mxu1 %v1243_v4  ;;  %v1261_v18 = vld [vmem:[%s1501_s11 + $0x70] ss:$8 sps:$4 sm:$0xff]   ;;  %v1262_v19 = vld [vmem:[%s1501_s11 + $0x84] ss:$8 sps:$4 sm:$0xff]   ;;  %v1264_v20 = vld [vmem:[%s1501_s11 + $0x80] ss:$8 sps:$4 sm:$0xff]  }
  0x2a   : > { %533 = vmatprep.subr.bf16.mxu0 %v1244_v5  ;;  %1091 = vmatprep.subr.bf16.mxu1 %v1244_v5  ;;  %v1265_v21 = vld [vmem:[%s1501_s11 + $0x94] ss:$8 sps:$4 sm:$0xff]   ;;  %v1267_v22 = vld [vmem:[%s1501_s11 + $0x90] ss:$8 sps:$4 sm:$0xff]   ;;  %v1268_v23 = vld [vmem:[%s1501_s11 + $0xa4] ss:$8 sps:$4 sm:$0xff]  }
  0x2b   : > { %v1270_v24 = vld [vmem:[%s1501_s11 + $0xa0] ss:$8 sps:$4 sm:$0xff]   ;;  %v1271_v25 = vld [vmem:[%s1501_s11 + $0xb4] ss:$8 sps:$4 sm:$0xff]   ;;  %v1273_v26 = vld [vmem:[%s1501_s11 + $0xb0] ss:$8 sps:$4 sm:$0xff]  }
  0x2c   : > { %v1274_v27 = vld [vmem:[%s1506_s23] ss:$8 sps:$4 sm:$0xff]   ;;  %v1277_v28 = vld [vmem:[%s1506_s23 + $0x30] ss:$8 sps:$4 sm:$0xff]   ;;  %v1280_v29 = vld [vmem:[%s1506_s23 + $0x14] ss:$8 sps:$4 sm:$0xff]  }
  0x2d   : > { %534 = vmatpush1.bf16.msra.mxu0 %v1246_v6  ;;  %1103 = vmatpush1.bf16.msra.mxu1 %v1246_v6  ;;  %v1282_v30 = vld [vmem:[%s1506_s23 + $0x44] ss:$8 sps:$4 sm:$0xff]   ;;  %v1284_v31 = vld [vmem:[%s1506_s23 + $0x10] ss:$8 sps:$4 sm:$0xff]   ;;  %v1285_v32 = vld [vmem:[%s1506_s23 + $0x40] ss:$8 sps:$4 sm:$0xff]  }
  0x2e   : > { %535 = vmatprep.subr.bf16.mxu0 %v1247_v7  ;;  %1092 = vmatprep.subr.bf16.mxu1 %v1247_v7  ;;  %v1286_v33 = vld [vmem:[%s1506_s23 + $0x24] ss:$8 sps:$4 sm:$0xff]   ;;  %v1288_v34 = vld [vmem:[%s1506_s23 + $0x54] ss:$8 sps:$4 sm:$0xff]   ;;  %v1290_v35 = vld [vmem:[%s1506_s23 + $0x20] ss:$8 sps:$4 sm:$0xff]  }
  0x2f   : > { %v1291_v36 = vld [vmem:[%s1506_s23 + $0x50] ss:$8 sps:$4 sm:$0xff]   ;;  %v288_v38 = vld [vmem:[#allocation2 + $0x60] sm:$0xff]  ;;  %v277_v39 = vld [vmem:[#allocation2 + $0x8] sm:$0xff]  ;;  %p1070_p12 = scmp.ne.s32.totalorder %s1366_s14, 6 }
  0x30   : > { %v289_v40 = vld [vmem:[#allocation2 + $0x68] sm:$0xff]  ;;  %v278_v43 = vld [vmem:[#allocation2 + $0x10] sm:$0xff]  ;;  %v279_v49 = vld [vmem:[#allocation2 + $0x18] sm:$0xff] }
  0x31   : > { %536 = vmatpush1.bf16.msra.mxu0 %v1249_v8  ;;  %1104 = vmatpush1.bf16.msra.mxu1 %v1249_v8  ;;  %v290_v44 = vld [vmem:[#allocation2 + $0x70] sm:$0xff]  ;;  %v291_v50 = vld [vmem:[#allocation2 + $0x78] sm:$0xff]  ;;  %v280_v61 = vld [vmem:[#allocation2 + $0x20] sm:$0xff] }
  0x32   : > { %537 = vmatprep.subr.bf16.mxu0 %v1250_v9  ;;  %1093 = vmatprep.subr.bf16.mxu1 %v1250_v9  ;;  %v292_v62 = vld [vmem:[#allocation2 + $0x80] sm:$0xff]  ;;  %v281_v63 = vld [vmem:[#allocation2 + $0x28] sm:$0xff]  ;;  %v282_v3 = vld [vmem:[#allocation2 + $0x30] sm:$0xff] }
  0x33   : > { %v293_v0 = vld [vmem:[#allocation2 + $0x88] sm:$0xff]  ;;  %v294_v4 = vld [vmem:[#allocation2 + $0x90] sm:$0xff]  ;;  %v283_v9 = vld [vmem:[#allocation2 + $0x38] sm:$0xff] }
  0x35   : > { %538 = vmatpush1.bf16.msra.mxu0 %v1252_v10  ;;  %1105 = vmatpush1.bf16.msra.mxu1 %v1252_v10  ;;  %v295_v10 = vld [vmem:[#allocation2 + $0x98] sm:$0xff] }
  0x36   : > { %539 = vmatprep.subr.bf16.mxu0 %v1253_v11  ;;  %1094 = vmatprep.subr.bf16.mxu1 %v1253_v11 }
  0x39   : > { %540 = vmatpush1.bf16.msra.mxu0 %v1255_v14  ;;  %1106 = vmatpush1.bf16.msra.mxu1 %v1255_v14 }
  0x3a   : > { %541 = vmatprep.subr.bf16.mxu0 %v1256_v15  ;;  %1095 = vmatprep.subr.bf16.mxu1 %v1256_v15 }
  0x3d   : > { %542 = vmatpush1.bf16.msra.mxu0 %v1258_v16  ;;  %1107 = vmatpush1.bf16.msra.mxu1 %v1258_v16 }
  0x3e   : > { %543 = vmatprep.subr.bf16.mxu0 %v1259_v17  ;;  %1096 = vmatprep.subr.bf16.mxu1 %v1259_v17 }
  0x41   : > { %544 = vmatpush1.bf16.msra.mxu0 %v1261_v18  ;;  %1108 = vmatpush1.bf16.msra.mxu1 %v1261_v18 }
  0x42   : > { %545 = vmatprep.subr.bf16.mxu0 %v1262_v19  ;;  %1097 = vmatprep.subr.bf16.mxu1 %v1262_v19 }
  0x45   : > { %546 = vmatpush1.bf16.msra.mxu0 %v1264_v20  ;;  %1109 = vmatpush1.bf16.msra.mxu1 %v1264_v20 }
  0x46   : > { %547 = vmatprep.subr.bf16.mxu0 %v1265_v21  ;;  %1098 = vmatprep.subr.bf16.mxu1 %v1265_v21  ;;  %v284_v21 = vld [vmem:[#allocation2 + $0x40] sm:$0xff] }
  0x49   : > { %548 = vmatpush1.bf16.msra.mxu0 %v1267_v22  ;;  %1110 = vmatpush1.bf16.msra.mxu1 %v1267_v22  ;;  %v296_v22 = vld [vmem:[#allocation2 + $0xa0] sm:$0xff] }
  0x4a   : > { %549 = vmatprep.subr.bf16.mxu0 %v1268_v23  ;;  %1099 = vmatprep.subr.bf16.mxu1 %v1268_v23  ;;  %v285_v23 = vld [vmem:[#allocation2 + $0x48] sm:$0xff] }
  0x4d   : > { %550 = vmatpush1.bf16.msra.mxu0 %v1270_v24  ;;  %1111 = vmatpush1.bf16.msra.mxu1 %v1270_v24  ;;  %v297_v24 = vld [vmem:[#allocation2 + $0xa8] sm:$0xff] }
  0x4e   : > { %551 = vmatprep.subr.bf16.mxu0 %v1271_v25  ;;  %1100 = vmatprep.subr.bf16.mxu1 %v1271_v25 }
  0x51   : > { %552 = vmatpush1.bf16.msra.mxu0 %v1273_v26  ;;  %1112 = vmatpush1.bf16.msra.mxu1 %v1273_v26 }
  0x54   : > { %562 = vmatmul.mubr.bf16.vlgmr.msra.gmra.mrb[0].mxu0 %v1274_v27  ;;  %592 = vmatmul.mubr.bf16.vlgmr.msra.gmra.mrb[0].mxu1 %v1277_v28  ;;  %v286_v27 = vld [vmem:[#allocation2 + $0x50] sm:$0xff] }
  0x55   : > { %1065 = vmatprep.mubr.msk.bf16.mxu0 %vm510_vm0, %v1280_v29  ;;  %1068 = vmatprep.mubr.msk.bf16.mxu1 %vm510_vm0, %v1282_v30  ;;  %v298_v28 = vld [vmem:[#allocation2 + $0xb0] sm:$0xff] }
  0x5c   : > { %572 = vmatmul.mubr.bf16.gmra.mrb[4].mxu0 %v1284_v31  ;;  %602 = vmatmul.mubr.bf16.gmra.mrb[4].mxu1 %v1285_v32 }
  0x5d   : > { %1066 = vmatprep.mubr.msk.bf16.mxu0 %vm510_vm0, %v1286_v33  ;;  %1069 = vmatprep.mubr.msk.bf16.mxu1 %vm510_vm0, %v1288_v34  ;;  %v287_v33 = vld [vmem:[#allocation2 + $0x58] sm:$0xff] }
  0x5e   : > { %v299_v34 = vld [vmem:[#allocation2 + $0xb8] sm:$0xff] }
  0x64   : > { %582 = vmatmul.mubr.bf16.gmra.mrb[8].mxu0 %v1290_v35  ;;  %612 = vmatmul.mubr.bf16.gmra.mrb[8].mxu1 %v1291_v36 }
 0x127   : > { %v563_v41 = vpop.f32.mrb[0].mxu0  ;;  %v593_v42 = vpop.f32.mrb[0].mxu1 }
 0x128   : > { %v622_v45 = vadd.f32 %v563_v41, %v276_v37  ;;  %v634_v46 = vadd.f32 %v593_v42, %v288_v38  ;;  %v565_v47 = vpop.f32.mrb[1].mxu0  ;;  %v595_v48 = vpop.f32.mrb[1].mxu1 }
 0x129   : > { %v623_v51 = vadd.f32 %v565_v47, %v277_v39  ;;  %v635_v52 = vadd.f32 %v595_v48, %v289_v40  ;;  %v567_v53 = vpop.f32.mrb[2].mxu0  ;;  %v597_v54 = vpop.f32.mrb[2].mxu1  ;;  %v698_v47 = vld [vmem:[%s1745_s2] sm:$0x3] (!%p1070_p12) }
 0x12a   : > { %646 = vst [vmem:[#allocation2] sm:$0xff] %v622_v45  ;;  %658 = vst [vmem:[#allocation2 + $0x60] sm:$0xff] %v634_v46  ;;  %v624_v55 = vadd.f32 %v567_v53, %v278_v43  ;;  %v636_v56 = vadd.f32 %v597_v54, %v290_v44  ;;  %v569_v57 = vpop.f32.mrb[3].mxu0  ;;  %v599_v58 = vpop.f32.mrb[3].mxu1  ;;  %v700_v45 = vlaneseq (!%p1070_p12) }
 0x12b   : > { %647 = vst [vmem:[#allocation2 + $0x8] sm:$0xff] %v623_v51  ;;  %659 = vst [vmem:[#allocation2 + $0x68] sm:$0xff] %v635_v52  ;;  %v625_v59 = vadd.f32 %v569_v57, %v279_v49  ;;  %v637_v60 = vadd.f32 %v599_v58, %v291_v50 }
 0x12c   : > { %648 = vst [vmem:[#allocation2 + $0x10] sm:$0xff] %v624_v55  ;;  %660 = vst [vmem:[#allocation2 + $0x70] sm:$0xff] %v636_v56  ;;  %v701_v46 = vshrl.u32 (!%p1070_p12), %v700_v45, 7 }
 0x12d   : > { %649 = vst [vmem:[#allocation2 + $0x18] sm:$0xff] %v625_v59  ;;  %661 = vst [vmem:[#allocation2 + $0x78] sm:$0xff] %v637_v60 }
 0x12e   : > { %v702_v49 = vsub.s32 (!%p1070_p12), 0, %v701_v46  ;;  %v706_v51 = vsub.s32 (!%p1070_p12), 1, %v701_v46 }
 0x12f   : > { %v573_v1 = vpop.f32.mrb[4].mxu0  ;;  %v603_v2 = vpop.f32.mrb[4].mxu1 }
 0x130   : > { %v626_v5 = vadd.f32 %v573_v1, %v280_v61  ;;  %v638_v6 = vadd.f32 %v603_v2, %v292_v62  ;;  %v575_v7 = vpop.f32.mrb[5].mxu0  ;;  %v605_v8 = vpop.f32.mrb[5].mxu1  ;;  %v1557_v55 = vrot.slane (!%p1070_p12), %v698_v47, %v702_v49  ;;  %v1559_v56 = vrot.slane (!%p1070_p12), %v698_v47, %v706_v51 }
 0x131   : > { %v627_v11 = vadd.f32 %v575_v7, %v281_v63  ;;  %v639_v12 = vadd.f32 %v605_v8, %v293_v0  ;;  %v577_v13 = vpop.f32.mrb[6].mxu0  ;;  %v607_v14 = vpop.f32.mrb[6].mxu1  ;;  %v674_v48 = vld [vmem:[#allocation2] sm:$0xff] (!%p1070_p12) }
 0x132   : > { %650 = vst [vmem:[#allocation2 + $0x20] sm:$0xff] %v626_v5  ;;  %662 = vst [vmem:[#allocation2 + $0x80] sm:$0xff] %v638_v6  ;;  %v628_v15 = vadd.f32 %v577_v13, %v282_v3  ;;  %v640_v16 = vadd.f32 %v607_v14, %v294_v4  ;;  %v579_v17 = vpop.f32.mrb[7].mxu0  ;;  %v609_v18 = vpop.f32.mrb[7].mxu1  ;;  %v675_v50 = vld [vmem:[#allocation2 + $0x8] sm:$0xff] (!%p1070_p12)  ;;  %v710_v60 = vadd.f32 (!%p1070_p12), %v1557_v55, %v674_v48  ;;  %v686_v8 = vld [vmem:[#allocation2 + $0x60] sm:$0xff] (!%p1070_p12) }
 0x133   : > { %651 = vst [vmem:[#allocation2 + $0x28] sm:$0xff] %v627_v11  ;;  %663 = vst [vmem:[#allocation2 + $0x88] sm:$0xff] %v639_v12  ;;  %v629_v19 = vadd.f32 %v579_v17, %v283_v9  ;;  %v641_v20 = vadd.f32 %v609_v18, %v295_v10  ;;  %v676_v52 = vld [vmem:[#allocation2 + $0x10] sm:$0xff] (!%p1070_p12)  ;;  %v711_v61 = vadd.f32 (!%p1070_p12), %v1559_v56, %v675_v50  ;;  %v687_v9 = vld [vmem:[#allocation2 + $0x68] sm:$0xff] (!%p1070_p12) }
 0x134   : > { %652 = vst [vmem:[#allocation2 + $0x30] sm:$0xff] %v628_v15  ;;  %664 = vst [vmem:[#allocation2 + $0x90] sm:$0xff] %v640_v16  ;;  %v677_v53 = vld [vmem:[#allocation2 + $0x18] sm:$0xff] (!%p1070_p12)  ;;  %v712_v62 = vadd.f32 (!%p1070_p12), %v1557_v55, %v676_v52  ;;  %v734_v10 = vmax.f32 (!%p1070_p12), %v710_v60, 0.0  ;;  %v688_v14 = vld [vmem:[#allocation2 + $0x70] sm:$0xff] (!%p1070_p12) }
 0x135   : > { %653 = vst [vmem:[#allocation2 + $0x38] sm:$0xff] %v629_v19  ;;  %665 = vst [vmem:[#allocation2 + $0x98] sm:$0xff] %v641_v20  ;;  %v713_v63 = vadd.f32 (!%p1070_p12), %v1559_v56, %v677_v53  ;;  %v735_v11 = vmax.f32 (!%p1070_p12), %v711_v61, 0.0  ;;  %v689_v15 = vld [vmem:[#allocation2 + $0x78] sm:$0xff] (!%p1070_p12) }
 0x136   : > { %v736_v12 = vmax.f32 (!%p1070_p12), %v712_v62, 0.0  ;;  %758 = vst [vmem:[%s1508_s24] sm:$0xff] (!%p1070_p12), %v734_v10 }
 0x137   : > { %v583_v25 = vpop.f32.mrb[8].mxu0  ;;  %v613_v26 = vpop.f32.mrb[8].mxu1  ;;  %673 = sbr.rel (%p1070_p12) target bundleno = 331 (0x14b), region = 40  ;;  %v737_v13 = vmax.f32 (!%p1070_p12), %v713_v63, 0.0  ;;  %759 = vst [vmem:[%s1508_s24 + $0x8] sm:$0xff] (!%p1070_p12), %v735_v11 }
 0x138   : > { %v630_v29 = vadd.f32 %v583_v25, %v284_v21  ;;  %v642_v30 = vadd.f32 %v613_v26, %v296_v22  ;;  %v585_v31 = vpop.f32.mrb[9].mxu0  ;;  %v615_v32 = vpop.f32.mrb[9].mxu1  ;;  %760 = vst [vmem:[%s1508_s24 + $0x10] sm:$0xff] (!%p1070_p12), %v736_v12 }
 0x139   : > { %v631_v35 = vadd.f32 %v585_v31, %v285_v23  ;;  %v643_v36 = vadd.f32 %v615_v32, %v297_v24  ;;  %v587_v37 = vpop.f32.mrb[10].mxu0  ;;  %v617_v38 = vpop.f32.mrb[10].mxu1  ;;  %v678_v54 = vld [vmem:[#allocation2 + $0x20] sm:$0xff] (!%p1070_p12)  ;;  %761 = vst [vmem:[%s1508_s24 + $0x18] sm:$0xff] (!%p1070_p12), %v737_v13 }
 0x13a   : > { %654 = vst [vmem:[#allocation2 + $0x40] sm:$0xff] %v630_v29  ;;  %666 = vst [vmem:[#allocation2 + $0xa0] sm:$0xff] %v642_v30  ;;  %v632_v39 = vadd.f32 %v587_v37, %v286_v27  ;;  %v644_v40 = vadd.f32 %v617_v38, %v298_v28  ;;  %v589_v41 = vpop.f32.mrb[11].mxu0  ;;  %v619_v42 = vpop.f32.mrb[11].mxu1  ;;  %v679_v57 = vld [vmem:[#allocation2 + $0x28] sm:$0xff] (!%p1070_p12)  ;;  %v714_v3 = vadd.f32 (!%p1070_p12), %v1557_v55, %v678_v54  ;;  %v690_v24 = vld [vmem:[#allocation2 + $0x80] sm:$0xff] (!%p1070_p12) }
 0x13b   : > { %655 = vst [vmem:[#allocation2 + $0x48] sm:$0xff] %v631_v35  ;;  %667 = vst [vmem:[#allocation2 + $0xa8] sm:$0xff] %v643_v36  ;;  %v633_v43 = vadd.f32 %v589_v41, %v287_v33  ;;  %v645_v44 = vadd.f32 %v619_v42, %v299_v34  ;;  %v680_v58 = vld [vmem:[#allocation2 + $0x30] sm:$0xff] (!%p1070_p12)  ;;  %v715_v4 = vadd.f32 (!%p1070_p12), %v1559_v56, %v679_v57  ;;  %v691_v25 = vld [vmem:[#allocation2 + $0x88] sm:$0xff] (!%p1070_p12) }
 0x13c   : > { %656 = vst [vmem:[#allocation2 + $0x50] sm:$0xff] %v632_v39  ;;  %668 = vst [vmem:[#allocation2 + $0xb0] sm:$0xff] %v644_v40  ;;  %v681_v59 = vld [vmem:[#allocation2 + $0x38] sm:$0xff] (!%p1070_p12)  ;;  %v716_v5 = vadd.f32 (!%p1070_p12), %v1557_v55, %v680_v58  ;;  %v738_v16 = vmax.f32 (!%p1070_p12), %v714_v3, 0.0  ;;  %v692_v26 = vld [vmem:[#allocation2 + $0x90] sm:$0xff] (!%p1070_p12)  ;;  %v722_v27 = vadd.f32 (!%p1070_p12), %v1557_v55, %v686_v8  ;;  %v723_v28 = vadd.f32 (!%p1070_p12), %v1559_v56, %v687_v9 }
 0x13d   : > { %657 = vst [vmem:[#allocation2 + $0x58] sm:$0xff] %v633_v43  ;;  %669 = vst [vmem:[#allocation2 + $0xb8] sm:$0xff] %v645_v44  ;;  %v717_v6 = vadd.f32 (!%p1070_p12), %v1559_v56, %v681_v59  ;;  %v739_v17 = vmax.f32 (!%p1070_p12), %v715_v4, 0.0  ;;  %v724_v29 = vadd.f32 (!%p1070_p12), %v1557_v55, %v688_v14  ;;  %v725_v30 = vadd.f32 (!%p1070_p12), %v1559_v56, %v689_v15  ;;  %v693_v31 = vld [vmem:[#allocation2 + $0x98] sm:$0xff] (!%p1070_p12) }
 0x13e   : > { %v740_v18 = vmax.f32 %v716_v5, 0.0  ;;  %762 = vst [vmem:[%s1508_s24 + $0x20] sm:$0xff] %v738_v16  ;;  %v746_v40 = vmax.f32 %v722_v27, 0.0  ;;  %v747_v41 = vmax.f32 %v723_v28, 0.0  ;;  %v726_v44 = vadd.f32 %v1557_v55, %v690_v24 }
 0x13f   : > { %v741_v19 = vmax.f32 %v717_v6, 0.0  ;;  %763 = vst [vmem:[%s1508_s24 + $0x28] sm:$0xff] %v739_v17  ;;  %v748_v42 = vmax.f32 %v724_v29, 0.0  ;;  %v749_v43 = vmax.f32 %v725_v30, 0.0  ;;  %v727_v45 = vadd.f32 %v1559_v56, %v691_v25 }
 0x140   : > { %764 = vst [vmem:[%s1508_s24 + $0x30] sm:$0xff] %v740_v18  ;;  %v728_v46 = vadd.f32 %v1557_v55, %v692_v26  ;;  %v729_v47 = vadd.f32 %v1559_v56, %v693_v31  ;;  %770 = vst [vmem:[%s1508_s24 + $0x60] sm:$0xff] %v746_v40  ;;  %v750_v52 = vmax.f32 %v726_v44, 0.0 }
 0x141   : > { %v682_v0 = vld [vmem:[#allocation2 + $0x40] sm:$0xff]  ;;  %765 = vst [vmem:[%s1508_s24 + $0x38] sm:$0xff] %v741_v19  ;;  %771 = vst [vmem:[%s1508_s24 + $0x68] sm:$0xff] %v747_v41  ;;  %v751_v53 = vmax.f32 %v727_v45, 0.0 }
 0x142   : > { %v683_v1 = vld [vmem:[#allocation2 + $0x48] sm:$0xff]  ;;  %v718_v20 = vadd.f32 %v1557_v55, %v682_v0  ;;  %v694_v32 = vld [vmem:[#allocation2 + $0xa0] sm:$0xff]  ;;  %772 = vst [vmem:[%s1508_s24 + $0x70] sm:$0xff] %v748_v42  ;;  %773 = vst [vmem:[%s1508_s24 + $0x78] sm:$0xff] %v749_v43  ;;  %v752_v54 = vmax.f32 %v728_v46, 0.0  ;;  %v753_v57 = vmax.f32 %v729_v47, 0.0 }
 0x143   : > { %v684_v2 = vld [vmem:[#allocation2 + $0x50] sm:$0xff]  ;;  %v719_v21 = vadd.f32 %v1559_v56, %v683_v1  ;;  %v695_v33 = vld [vmem:[#allocation2 + $0xa8] sm:$0xff]  ;;  %v730_v48 = vadd.f32 %v1557_v55, %v694_v32  ;;  %774 = vst [vmem:[%s1508_s24 + $0x80] sm:$0xff] %v750_v52  ;;  %775 = vst [vmem:[%s1508_s24 + $0x88] sm:$0xff] %v751_v53 }
 0x144   : > { %v685_v7 = vld [vmem:[#allocation2 + $0x58] sm:$0xff]  ;;  %v720_v22 = vadd.f32 %v1557_v55, %v684_v2  ;;  %v742_v34 = vmax.f32 %v718_v20, 0.0  ;;  %v696_v38 = vld [vmem:[#allocation2 + $0xb0] sm:$0xff]  ;;  %v731_v49 = vadd.f32 %v1559_v56, %v695_v33  ;;  %776 = vst [vmem:[%s1508_s24 + $0x90] sm:$0xff] %v752_v54  ;;  %777 = vst [vmem:[%s1508_s24 + $0x98] sm:$0xff] %v753_v57 }
 0x145   : > { %v721_v23 = vadd.f32 %v1559_v56, %v685_v7  ;;  %v743_v35 = vmax.f32 %v719_v21, 0.0  ;;  %v697_v39 = vld [vmem:[#allocation2 + $0xb8] sm:$0xff]  ;;  %v732_v50 = vadd.f32 %v1557_v55, %v696_v38  ;;  %v754_v58 = vmax.f32 %v730_v48, 0.0 }
 0x146   : > { %v744_v36 = vmax.f32 %v720_v22, 0.0  ;;  %766 = vst [vmem:[%s1508_s24 + $0x40] sm:$0xff] %v742_v34  ;;  %v733_v51 = vadd.f32 %v1559_v56, %v697_v39  ;;  %v755_v59 = vmax.f32 %v731_v49, 0.0 }
 0x147   : > { %v745_v37 = vmax.f32 %v721_v23, 0.0  ;;  %767 = vst [vmem:[%s1508_s24 + $0x48] sm:$0xff] %v743_v35  ;;  %v756_v60 = vmax.f32 %v732_v50, 0.0  ;;  %778 = vst [vmem:[%s1508_s24 + $0xa0] sm:$0xff] %v754_v58 }
 0x148   : > { %768 = vst [vmem:[%s1508_s24 + $0x50] sm:$0xff] %v744_v36  ;;  %v757_v61 = vmax.f32 %v733_v51, 0.0  ;;  %779 = vst [vmem:[%s1508_s24 + $0xa8] sm:$0xff] %v755_v59 }
 0x149   : > { %769 = vst [vmem:[%s1508_s24 + $0x58] sm:$0xff] %v745_v37  ;;  %780 = vst [vmem:[%s1508_s24 + $0xb0] sm:$0xff] %v756_v60 }
 0x14a   : > { %781 = vst [vmem:[%s1508_s24 + $0xb8] sm:$0xff] %v757_v61 }
 0x14b PF: > { %788 = sbr.rel (!%p1479_p6) target bundleno = 402 (0x192), region = 44  ;;  %s790_s14 = ssub.s32 (%p1479_p6), 21, %s1492_s27 }
 0x14c   : > { %s1088_s29 = smul.u32 (%p1479_p6), 192, %s1370_s15  ;;  %p791_p13 = scmp.lt.s32.totalorder (%p1479_p6), %s790_s14, 12 }
 0x14e   : > { %s1616_s5 = scalar_lea.vmem (%p1479_p6), %s1746_s3, %s1088_s29  }
 0x152   : > { %s1765_s14 = smov (!%p791_p13, %s790_s14), 12 }
 0x153   : > { %s1085_s6 = sshll.u32 %s1765_s14, 8 }
 0x154   : > { %p1076_p0 = scmp.eq.s32.totalorder %s1085_s6, 0 }
 0x155   : > { %1292 = sdivrem.u32 (!%p1076_p0), %s1765_s14, 12 }
 0x156   : > { %801 = sbr.rel (%p1076_p0) target bundleno = 402 (0x192), region = 48 }
 0x15e   : > { %s1622_s22 = spop.drf %1292 }
 0x15f   : > { %p1077_p1 = scmp.le.s32.totalorder %s1622_s22, 0 }
 0x160   : > { %s1748_s15 = smov (!%p1077_p1), %s1616_s5  ;;  %s1749_s27 = smov (!%p1077_p1), %s1508_s24 }
 0x161   : > { %958 = sbr.rel (%p1077_p1) target bundleno = 373 (0x175), region = 99  ;;  %s1631_s7 = smov (!%p1077_p1), 0  }
 0x162   : > { %s1633_s8 = smov (!%p1077_p1), 0  }
 0x168 LB: >> { %v815_v55 = vld [vmem:[%s1390_s27] sm:$0xff]  ;;  %v817_v56 = vld [vmem:[%s1390_s27 + $0x10] sm:$0xff]  ;;  %s863_s9 = sadd.s32 1, %s1394_s7  ;;  %v839_v8 = vld [vmem:[%s1390_s27 + $0x8] sm:$0xff]  ;;  %s809_s8 = sadd.s32 1, %s1398_s8   ;;  %s1398_s8 = sphi %s1633_s8, %s809_s8   ;;  %s1394_s7 = sphi %s1631_s7, %s1751_s7   ;;  %s1390_s27 = sphi %s1749_s27, %s868_s27   ;;  %s1386_s15 = sphi %s1748_s15, %s1750_s15  }
 0x169   : >> { %v819_v62 = vld [vmem:[%s1390_s27 + $0x20] sm:$0xff]  ;;  %816 = vst [vmem:[%s1386_s15] sm:$0xff] %v815_v55  ;;  %818 = vst [vmem:[%s1386_s15 + $0x10] sm:$0xff] %v817_v56  ;;  %v821_v63 = vld [vmem:[%s1390_s27 + $0x30] sm:$0xff]  ;;  %p864_p2 = scmp.ge.s32.totalorder %s863_s9, %s1622_s22  ;;  %p808_p3 = scmp.ge.s32.totalorder %s809_s8, %s1622_s22 }
 0x16a   : >> { %820 = vst [vmem:[%s1386_s15 + $0x20] sm:$0xff] %v819_v62  ;;  %v823_v0 = vld [vmem:[%s1390_s27 + $0x40] sm:$0xff]  ;;  %v825_v1 = vld [vmem:[%s1390_s27 + $0x50] sm:$0xff]  ;;  %822 = vst [vmem:[%s1386_s15 + $0x30] sm:$0xff] %v821_v63 }
 0x16b   : >> { %824 = vst [vmem:[%s1386_s15 + $0x40] sm:$0xff] %v823_v0  ;;  %826 = vst [vmem:[%s1386_s15 + $0x50] sm:$0xff] %v825_v1  ;;  %v827_v2 = vld [vmem:[%s1390_s27 + $0x60] sm:$0xff]  ;;  %v829_v3 = vld [vmem:[%s1390_s27 + $0x70] sm:$0xff]  ;;  %s1767_s9 = smov (%p864_p2, %s863_s9), 0 }
 0x16c   : >> { %v831_v4 = vld [vmem:[%s1390_s27 + $0x80] sm:$0xff]  ;;  %828 = vst [vmem:[%s1386_s15 + $0x60] sm:$0xff] %v827_v2  ;;  %830 = vst [vmem:[%s1386_s15 + $0x70] sm:$0xff] %v829_v3  ;;  %v833_v5 = vld [vmem:[%s1390_s27 + $0x90] sm:$0xff]  ;;  %s866_s10 = smul.u32 192, %s1767_s9  ;;  %s1751_s7 = smov %s1767_s9 }
 0x16d   : >> { %832 = vst [vmem:[%s1386_s15 + $0x80] sm:$0xff] %v831_v4  ;;  %v835_v6 = vld [vmem:[%s1390_s27 + $0xa0] sm:$0xff]  ;;  %v837_v7 = vld [vmem:[%s1390_s27 + $0xb0] sm:$0xff]  ;;  %834 = vst [vmem:[%s1386_s15 + $0x90] sm:$0xff] %v833_v5 }
 0x16e   : >> { %836 = vst [vmem:[%s1386_s15 + $0xa0] sm:$0xff] %v835_v6  ;;  %838 = vst [vmem:[%s1386_s15 + $0xb0] sm:$0xff] %v837_v7  ;;  %v841_v9 = vld [vmem:[%s1390_s27 + $0x18] sm:$0xff]  ;;  %v843_v10 = vld [vmem:[%s1390_s27 + $0x28] sm:$0xff]  ;;  %s869_s11 = scalar_lea.vmem %s1616_s5, %s866_s10   ;;  %811 = sbr.rel (!%p808_p3) target bundleno = 360 (0x168), region = 105 }
 0x16f   : >> { %840 = vst [vmem:[%s1386_s15 + $0x8] sm:$0xff] %v839_v8  ;;  %842 = vst [vmem:[%s1386_s15 + $0x18] sm:$0xff] %v841_v9  ;;  %v845_v11 = vld [vmem:[%s1390_s27 + $0x38] sm:$0xff]  ;;  %v847_v12 = vld [vmem:[%s1390_s27 + $0x48] sm:$0xff] }
 0x170   : >> { %844 = vst [vmem:[%s1386_s15 + $0x28] sm:$0xff] %v843_v10  ;;  %v849_v13 = vld [vmem:[%s1390_s27 + $0x58] sm:$0xff]  ;;  %846 = vst [vmem:[%s1386_s15 + $0x38] sm:$0xff] %v845_v11  ;;  %v851_v14 = vld [vmem:[%s1390_s27 + $0x68] sm:$0xff] }
 0x171   : >> { %848 = vst [vmem:[%s1386_s15 + $0x48] sm:$0xff] %v847_v12  ;;  %850 = vst [vmem:[%s1386_s15 + $0x58] sm:$0xff] %v849_v13  ;;  %v853_v15 = vld [vmem:[%s1390_s27 + $0x78] sm:$0xff]  ;;  %v855_v16 = vld [vmem:[%s1390_s27 + $0x88] sm:$0xff] }
 0x172   : >> { %852 = vst [vmem:[%s1386_s15 + $0x68] sm:$0xff] %v851_v14  ;;  %854 = vst [vmem:[%s1386_s15 + $0x78] sm:$0xff] %v853_v15  ;;  %v857_v17 = vld [vmem:[%s1390_s27 + $0x98] sm:$0xff]  ;;  %v859_v18 = vld [vmem:[%s1390_s27 + $0xa8] sm:$0xff] }
 0x173   : >> { %856 = vst [vmem:[%s1386_s15 + $0x88] sm:$0xff] %v855_v16  ;;  %v861_v19 = vld [vmem:[%s1390_s27 + $0xb8] sm:$0xff]  ;;  %s868_s27 = scalar_lea.vmem %s1508_s24, %s866_s10 [#allocation3]   ;;  %858 = vst [vmem:[%s1386_s15 + $0x98] sm:$0xff] %v857_v17 }
 0x174   : >> { %860 = vst [vmem:[%s1386_s15 + $0xa8] sm:$0xff] %v859_v18  ;;  %862 = vst [vmem:[%s1386_s15 + $0xb8] sm:$0xff] %v861_v19  ;;  %s1750_s15 = smov %s869_s11 }
 0x175 PF: > { %1294 = sdivrem.u32 %s1765_s14, 12 }
 0x176   : > { %s1078_s12 = smul.u32 192, %s1622_s22 }
 0x178   : > { %s1713_s21 = scalar_lea.vmem %s1508_s24, %s1078_s12 [#allocation3]   ;;  %s1716_s23 = scalar_lea.vmem %s1616_s5, %s1078_s12  }
 0x17e   : > { %s1295_s26 = spop.drf %1294 }
 0x17f   : > { %p1080_p4 = scmp.le.s32.totalorder %s1295_s26, 0 }
 0x180   : > { %s1400_s28 = smov (!%p1080_p4), %s1716_s23   ;;  %s1404_s29 = smov (!%p1080_p4), %s1713_s21  }
 0x181   : > { %972 = sbr.rel (%p1080_p4) target bundleno = 402 (0x192), region = 110  ;;  %s1408_s30 = smov (!%p1080_p4), 0  }
 0x182   : > { %s1412_s4 = smov (!%p1080_p4), 0  }
 0x188 LB: >> { %v886_v20 = vld [vmem:[%s1406_s29] sm:$0xff]  ;;  %v888_v21 = vld [vmem:[%s1406_s29 + $0x8] sm:$0xff]  ;;  %s890_s24 = sadd.s32 1, %s1410_s30  ;;  %s880_s4 = sadd.s32 1, %s1414_s4   ;;  %s1414_s4 = sphi %s1412_s4, %s880_s4   ;;  %s1410_s30 = sphi %s1408_s30, %s1409_s30   ;;  %s1406_s29 = sphi %s1404_s29, %s895_s29   ;;  %s1402_s28 = sphi %s1400_s28, %s896_s28  }
 0x189   : >> { %887 = vst [vmem:[%s1402_s28] sm:$0xff] %v886_v20  ;;  %889 = vst [vmem:[%s1402_s28 + $0x8] sm:$0xff] %v888_v21  ;;  %p891_p5 = scmp.ge.s32.totalorder %s890_s24, %s1295_s26  ;;  %p879_p6 = scmp.ge.s32.totalorder %s880_s4, %s1295_s26 }
 0x18b   : >> { %s1769_s24 = smov (%p891_p5, %s890_s24), 0  ;;  %882 = sbr.rel (!%p879_p6) target bundleno = 392 (0x188), region = 116 }
 0x18c   : >> { %s1081_s14 = sshll.u32 %s1769_s24, 4  ;;  %s1409_s30 = smov %s1769_s24  }
 0x18d   : >> { %s895_s29 = scalar_lea.vmem %s1713_s21, %s1081_s14 [#allocation3]   ;;  %s896_s28 = scalar_lea.vmem %s1716_s23, %s1081_s14  }
 0x192 PF: > { %s13_s18 = sadd.s32 1, %s1382_s18   ;;  %s1752_s12 = smov %s1362_s13 }
 0x193   : > { %p10_p7 = scmp.ge.s32.totalorder %s13_s18, 16   ;;  %s1753_s13 = smov %s1489_s25 }
 0x194   : > { %s1754_s14 = smov %s1374_s16  ;;  %s1755_s15 = smov %s1378_s17 }
 0x195   : > { %s1756_s16 = smov %s1759_s19  ;;  %s1757_s17 = smov %s1763_s20 }
 0x196   :  { %12 = sbr.rel (!%p10_p7) target bundleno = 4 (0x4), region = 127 }

// kernel: reduction_block_b.11
= control target key start
LH: loop header
LB: loop body
LE: loop exit
PB: predicated region body
PF: predicated region fallthrough
CT: control target
= control target key end

     0   :  { %s758_s12 = smov 0   ;;  %s760_s13 = smov 0   ;;  %s857_s0 = inlined_call_operand.vmem [shape: bf16[9,32,192], index: 0, kind: input, shape index: {}]   ;;  %s858_s1 = inlined_call_operand.vmem [shape: bf16[9,192,256], index: 1, kind: input, shape index: {}]   ;;  %s859_s2 = inlined_call_operand.vmem [shape: f32[1,256], index: 2, kind: input, shape index: {}]   ;;  %s860_s3 = inlined_call_operand.vmem [shape: f32[32,256], index: 3, kind: output, shape index: {}]  }
   0x1   :  { %s762_s14 = smov 0   ;;  %s764_s15 = smov 0  }
   0x2   :  { %s766_s16 = smov 0  }
   0x3 LB: > { %s22_s17 = sadd.s32 1, %s727_s14  ;;  %s25_s18 = sadd.s32 1, %s731_s15  ;;  %s735_s16 = sphi %s766_s16, %s13_s16   ;;  %s731_s15 = sphi %s764_s15, %s864_s15   ;;  %s727_s14 = sphi %s762_s14, %s863_s14   ;;  %s723_s13 = sphi %s760_s13, %s862_s13   ;;  %s719_s12 = sphi %s758_s12, %s861_s12  }
   0x4   : > { %p23_p0 = scmp.ge.s32.totalorder %s22_s17, 9  ;;  %p575_p1 = scmp.ge.s32.totalorder %s735_s16, 1 }
   0x5   : > { %p167_p2 = scmp.lt.s32.totalorder %s735_s16, 19 }
   0x6   : > { %s866_s17 = smov (%p23_p0, %s22_s17), 0  ;;  %s868_s18 = smov (!%p23_p0, %s25_s18), %s731_s15 }
   0x7   : > { %p168_p3 = pnand %p575_p1, %p167_p2  ;;  %p27_p4 = scmp.ge.s32.totalorder %s868_s18, 2 }
   0x8   : > { %s576_s19 = sshll.u32 (!%p168_p3), %s723_s13, 1  ;;  %p203_p5 = scmp.lt.s32.totalorder (!%p168_p3), %s719_s12, 8 }
   0x9   : > { %s870_s18 = smov (%p27_p4, %s868_s18), 0  ;;  %171 = sbr.rel (%p168_p3) target bundleno = 303 (0x12f), region = 32 }
   0xa   : > { %p205_p6 = scmp.lt.s32.totalorder (!%p168_p3), %s576_s19, 3  ;;  %p584_p7 = scmp.ne.s32.totalorder (!%p168_p3), %s719_s12, 0 }
  0x10   : > { %s204_s20 = scalar_select %p203_p5, %s719_s12, 8 }
  0x11   : > { %s872_s19 = smov (!%p205_p6, %s576_s19), 3  ;;  %229 = sbr.rel (%p584_p7) target bundleno = 24 (0x18), region = 36 }
  0x12   : > { %s578_s21 = sshll.u32 %s204_s20, 3  ;;  %s616_s22 = smul.u32 192, %s204_s20  ;;  %v737_v0 = vmov (!%p584_p7), 0.0  }
  0x13   : > { %s577_s23 = sshll.u32 %s872_s19, 1  ;;  %s615_s24 = sshll.u32 %s872_s19, 4  ;;  %230 = vst [vmem:[#allocation2] sm:$0xff] (!%p584_p7), %v737_v0  ;;  %231 = vst [vmem:[#allocation2 + $0x8] sm:$0xff] (!%p584_p7), %v737_v0 }
  0x14   : > { %s209_s25 = sadd.s32 %s578_s21, %s577_s23  ;;  %s795_s28 = scalar_lea.vmem %s858_s1, %s616_s22  ;;  %232 = vst [vmem:[#allocation2 + $0x10] sm:$0xff] (!%p584_p7), %v737_v0  ;;  %233 = vst [vmem:[#allocation2 + $0x18] sm:$0xff] (!%p584_p7), %v737_v0 }
  0x15   : > { %s579_s29 = sshll.u32 %s209_s25, 2  ;;  %s800_s5 = scalar_lea.vmem %s860_s3, %s615_s24 }
  0x16   : > { %s805_s8 = scalar_lea.vmem %s857_s0, %s579_s29 }
  0x18 PF: > { %v658_v1 = vld [vmem:[%s795_s28 + $0x4] ss:$8 sps:$4 sm:$0xff]   ;;  %v660_v2 = vld [vmem:[%s795_s28] ss:$8 sps:$4 sm:$0xff]   ;;  %v661_v3 = vld [vmem:[%s795_s28 + $0x14] ss:$8 sps:$4 sm:$0xff]  }
  0x19   : > { %397 = vmatprep.subr.bf16.mxu0 %v658_v1  ;;  %v663_v4 = vld [vmem:[%s795_s28 + $0x10] ss:$8 sps:$4 sm:$0xff]   ;;  %v664_v5 = vld [vmem:[%s795_s28 + $0x24] ss:$8 sps:$4 sm:$0xff]   ;;  %v666_v6 = vld [vmem:[%s795_s28 + $0x20] ss:$8 sps:$4 sm:$0xff]  }
  0x1a   : > { %398 = vmatpush1.bf16.msra.mxu0 %v660_v2  ;;  %v667_v7 = vld [vmem:[%s795_s28 + $0x34] ss:$8 sps:$4 sm:$0xff]   ;;  %v669_v8 = vld [vmem:[%s795_s28 + $0x30] ss:$8 sps:$4 sm:$0xff]   ;;  %v670_v9 = vld [vmem:[%s795_s28 + $0x44] ss:$8 sps:$4 sm:$0xff]  }
  0x1b   : > { %399 = vmatprep.subr.bf16.mxu0 %v661_v3  ;;  %v672_v10 = vld [vmem:[%s795_s28 + $0x40] ss:$8 sps:$4 sm:$0xff]   ;;  %v673_v11 = vld [vmem:[%s795_s28 + $0x54] ss:$8 sps:$4 sm:$0xff]   ;;  %vm393_vm0 = vcmask 523264   ;;  %p612_p8 = scmp.ne.s32.totalorder %s719_s12, 8 }
  0x1c   : > { %v696_v12 = vld [vmem:[%s805_s8 + $0x4] ss:$8 sps:$4 sm:$0xff]   ;;  %v675_v13 = vld [vmem:[%s795_s28 + $0x50] ss:$8 sps:$4 sm:$0xff]   ;;  %v678_v15 = vld [vmem:[%s795_s28 + $0x60] ss:$8 sps:$4 sm:$0xff]   ;;  %v458_v39 = vlaneseq (!%p612_p8) }
  0x1d   : > { %611 = vmatprep.mubr.msk.bf16.mxu0 %vm393_vm0, %v696_v12  ;;  %v676_v14 = vld [vmem:[%s795_s28 + $0x64] ss:$8 sps:$4 sm:$0xff]   ;;  %v679_v16 = vld [vmem:[%s795_s28 + $0x74] ss:$8 sps:$4 sm:$0xff]   ;;  %v681_v17 = vld [vmem:[%s795_s28 + $0x70] ss:$8 sps:$4 sm:$0xff]  }
  0x1e   : > { %400 = vmatpush1.bf16.msra.mxu0 %v663_v4  ;;  %v682_v18 = vld [vmem:[%s795_s28 + $0x84] ss:$8 sps:$4 sm:$0xff]   ;;  %v684_v19 = vld [vmem:[%s795_s28 + $0x80] ss:$8 sps:$4 sm:$0xff]   ;;  %v685_v20 = vld [vmem:[%s795_s28 + $0x94] ss:$8 sps:$4 sm:$0xff]  }
  0x1f   : > { %401 = vmatprep.subr.bf16.mxu0 %v664_v5  ;;  %v687_v21 = vld [vmem:[%s795_s28 + $0x90] ss:$8 sps:$4 sm:$0xff]   ;;  %v688_v22 = vld [vmem:[%s795_s28 + $0xa4] ss:$8 sps:$4 sm:$0xff]   ;;  %v690_v23 = vld [vmem:[%s795_s28 + $0xa0] ss:$8 sps:$4 sm:$0xff]  }
  0x20   : > { %v691_v24 = vld [vmem:[%s795_s28 + $0xb4] ss:$8 sps:$4 sm:$0xff]   ;;  %v693_v25 = vld [vmem:[%s795_s28 + $0xb0] ss:$8 sps:$4 sm:$0xff]   ;;  %v694_v26 = vld [vmem:[%s805_s8] ss:$8 sps:$4 sm:$0xff]  }
  0x21   : > { %v234_v27 = vld [vmem:[#allocation2] sm:$0xff]  ;;  %v235_v28 = vld [vmem:[#allocation2 + $0x8] sm:$0xff]  ;;  %v236_v30 = vld [vmem:[#allocation2 + $0x10] sm:$0xff]  ;;  %v459_v40 = vshrl.u32 (!%p612_p8), %v458_v39, 7 }
  0x22   : > { %402 = vmatpush1.bf16.msra.mxu0 %v666_v6  ;;  %v237_v33 = vld [vmem:[#allocation2 + $0x18] sm:$0xff]  ;;  %v456_v41 = vld [vmem:[%s859_s2] sm:$0x3] (!%p612_p8) }
  0x23   : > { %403 = vmatprep.subr.bf16.mxu0 %v667_v7  ;;  %v460_v43 = vsub.s32 (!%p612_p8), 0, %v459_v40  ;;  %v464_v44 = vsub.s32 (!%p612_p8), 1, %v459_v40 }
  0x25   : > { %v461_v48 = vrot.slane (!%p612_p8), %v456_v41, %v460_v43  ;;  %v465_v49 = vrot.slane (!%p612_p8), %v456_v41, %v464_v44 }
  0x26   : > { %404 = vmatpush1.bf16.msra.mxu0 %v669_v8 }
  0x27   : > { %405 = vmatprep.subr.bf16.mxu0 %v670_v9 }
  0x2a   : > { %406 = vmatpush1.bf16.msra.mxu0 %v672_v10 }
  0x2b   : > { %407 = vmatprep.subr.bf16.mxu0 %v673_v11 }
  0x2e   : > { %408 = vmatpush1.bf16.msra.mxu0 %v675_v13 }
  0x2f   : > { %409 = vmatprep.subr.bf16.mxu0 %v676_v14 }
  0x32   : > { %410 = vmatpush1.bf16.msra.mxu0 %v678_v15 }
  0x33   : > { %411 = vmatprep.subr.bf16.mxu0 %v679_v16 }
  0x36   : > { %412 = vmatpush1.bf16.msra.mxu0 %v681_v17 }
  0x37   : > { %413 = vmatprep.subr.bf16.mxu0 %v682_v18 }
  0x3a   : > { %414 = vmatpush1.bf16.msra.mxu0 %v684_v19 }
  0x3b   : > { %415 = vmatprep.subr.bf16.mxu0 %v685_v20 }
  0x3e   : > { %416 = vmatpush1.bf16.msra.mxu0 %v687_v21 }
  0x3f   : > { %417 = vmatprep.subr.bf16.mxu0 %v688_v22 }
  0x42   : > { %418 = vmatpush1.bf16.msra.mxu0 %v690_v23 }
  0x43   : > { %419 = vmatprep.subr.bf16.mxu0 %v691_v24 }
  0x46   : > { %420 = vmatpush1.bf16.msra.mxu0 %v693_v25 }
  0x49   : > { %430 = vmatmul.mubr.bf16.vlgmr.msra.gmra.mrb[0].mxu0 %v694_v26 }
 0x11c   : > { %v431_v29 = vpop.f32.mrb[0].mxu0  ;;  %451 = sbr.rel (%p612_p8) target bundleno = 303 (0x12f), region = 40 }
 0x11d   : > { %v440_v31 = vadd.f32 %v431_v29, %v234_v27  ;;  %v433_v32 = vpop.f32.mrb[1].mxu0 }
 0x11e   : > { %v441_v34 = vadd.f32 %v433_v32, %v235_v28  ;;  %v435_v35 = vpop.f32.mrb[2].mxu0 }
 0x11f   : > { %444 = vst [vmem:[#allocation2] sm:$0xff] %v440_v31  ;;  %v442_v36 = vadd.f32 %v435_v35, %v236_v30  ;;  %v437_v37 = vpop.f32.mrb[3].mxu0 }
 0x120   : > { %445 = vst [vmem:[#allocation2 + $0x8] sm:$0xff] %v441_v34  ;;  %v443_v38 = vadd.f32 %v437_v37, %v237_v33 }
 0x121   : > { %446 = vst [vmem:[#allocation2 + $0x10] sm:$0xff] %v442_v36 }
 0x122   : > { %447 = vst [vmem:[#allocation2 + $0x18] sm:$0xff] %v443_v38 }
 0x126   : > { %v452_v42 = vld [vmem:[#allocation2] sm:$0xff] }
 0x127   : > { %v453_v45 = vld [vmem:[#allocation2 + $0x8] sm:$0xff]  ;;  %v468_v50 = vadd.f32 %v461_v48, %v452_v42 }
 0x128   : > { %v454_v46 = vld [vmem:[#allocation2 + $0x10] sm:$0xff]  ;;  %v469_v51 = vadd.f32 %v465_v49, %v453_v45 }
 0x129   : > { %v455_v47 = vld [vmem:[#allocation2 + $0x18] sm:$0xff]  ;;  %v470_v52 = vadd.f32 %v461_v48, %v454_v46  ;;  %v472_v54 = vmax.f32 %v468_v50, 0.0 }
 0x12a   : > { %v471_v53 = vadd.f32 %v465_v49, %v455_v47  ;;  %v473_v55 = vmax.f32 %v469_v51, 0.0 }
 0x12b   : > { %v474_v56 = vmax.f32 %v470_v52, 0.0  ;;  %476 = vst [vmem:[%s800_s5] sm:$0xff] %v472_v54 }
 0x12c   : > { %v475_v57 = vmax.f32 %v471_v53, 0.0  ;;  %477 = vst [vmem:[%s800_s5 + $0x8] sm:$0xff] %v473_v55 }
 0x12d   : > { %478 = vst [vmem:[%s800_s5 + $0x10] sm:$0xff] %v474_v56 }
 0x12e   : > { %479 = vst [vmem:[%s800_s5 + $0x18] sm:$0xff] %v475_v57 }
 0x12f PF: > { %s13_s16 = sadd.s32 1, %s735_s16   ;;  %s861_s12 = smov %s727_s14 }
 0x130   : > { %p10_p9 = scmp.ge.s32.totalorder %s13_s16, 20   ;;  %s862_s13 = smov %s731_s15 }
 0x131   : > { %s863_s14 = smov %s866_s17  ;;  %s864_s15 = smov %s870_s18 }
 0x132   :  { %12 = sbr.rel (!%p10_p9) target bundleno = 3 (0x3), region = 73 }

// kernel: reduction_block_b.7
= control target key start
LH: loop header
LB: loop body
LE: loop exit
PB: predicated region body
PF: predicated region fallthrough
CT: control target
= control target key end

     0   :  { %s942_s12 = smov 0   ;;  %s944_s13 = smov 0   ;;  %s1067_s0 = inlined_call_operand.vmem [shape: bf16[9,32,192], index: 0, kind: input, shape index: {}]   ;;  %s1068_s1 = inlined_call_operand.vmem [shape: bf16[9,192,384], index: 1, kind: input, shape index: {}]   ;;  %s1069_s2 = inlined_call_operand.vmem [shape: f32[1,384], index: 2, kind: input, shape index: {}]   ;;  %s1070_s3 = inlined_call_operand.vmem [shape: f32[32,384], index: 3, kind: output, shape index: {}]  }
   0x1   :  { %s946_s14 = smov 0   ;;  %s948_s15 = smov 0  }
   0x2   :  { %s950_s16 = smov 0  }
   0x3 LB: > { %s22_s17 = sadd.s32 1, %s910_s14  ;;  %s25_s18 = sadd.s32 1, %s914_s15  ;;  %s918_s16 = sphi %s950_s16, %s13_s16   ;;  %s914_s15 = sphi %s948_s15, %s1074_s15   ;;  %s910_s14 = sphi %s946_s14, %s1073_s14   ;;  %s906_s13 = sphi %s944_s13, %s1072_s13   ;;  %s902_s12 = sphi %s942_s12, %s1071_s12  }
   0x4   : > { %p23_p0 = scmp.ge.s32.totalorder %s22_s17, 9  ;;  %p733_p1 = scmp.ge.s32.totalorder %s918_s16, 1 }
   0x5   : > { %p167_p2 = scmp.lt.s32.totalorder %s918_s16, 19 }
   0x6   : > { %s1076_s17 = smov (%p23_p0, %s22_s17), 0  ;;  %s1078_s18 = smov (!%p23_p0, %s25_s18), %s914_s15 }
   0x7   : > { %p168_p3 = pnand %p733_p1, %p167_p2  ;;  %p27_p4 = scmp.ge.s32.totalorder %s1078_s18, 2 }
   0x8   : > { %s734_s19 = sshll.u32 (!%p168_p3), %s906_s13, 1  ;;  %p203_p5 = scmp.lt.s32.totalorder (!%p168_p3), %s902_s12, 8 }
   0x9   : > { %s1080_s18 = smov (%p27_p4, %s1078_s18), 0  ;;  %171 = sbr.rel (%p168_p3) target bundleno = 303 (0x12f), region = 32 }
   0xa   : > { %p205_p6 = scmp.lt.s32.totalorder (!%p168_p3), %s734_s19, 3  ;;  %p741_p7 = scmp.ne.s32.totalorder (!%p168_p3), %s902_s12, 0 }
  0x10   : > { %s204_s20 = scalar_select %p203_p5, %s902_s12, 8 }
  0x11   : > { %s1082_s19 = smov (!%p205_p6, %s734_s19), 3  ;;  %229 = sbr.rel (%p741_p7) target bundleno = 24 (0x18), region = 36 }
  0x12   : > { %s736_s21 = sshll.u32 %s204_s20, 3  ;;  %s785_s22 = smul.u32 288, %s204_s20  ;;  %v920_v0 = vmov (!%p741_p7), 0.0  }
  0x13   : > { %s735_s23 = sshll.u32 %s1082_s19, 1  ;;  %s786_s24 = smul.u32 24, %s1082_s19  ;;  %230 = vst [vmem:[#allocation2] sm:$0xff] (!%p741_p7), %v920_v0  ;;  %231 = vst [vmem:[#allocation2 + $0x8] sm:$0xff] (!%p741_p7), %v920_v0 }
  0x14   : > { %s209_s25 = sadd.s32 %s736_s21, %s735_s23  ;;  %s979_s28 = scalar_lea.vmem %s1068_s1, %s785_s22  ;;  %232 = vst [vmem:[#allocation2 + $0x10] sm:$0xff] (!%p741_p7), %v920_v0  ;;  %233 = vst [vmem:[#allocation2 + $0x18] sm:$0xff] (!%p741_p7), %v920_v0 }
  0x15   : > { %s737_s29 = sshll.u32 %s209_s25, 2  ;;  %s984_s5 = scalar_lea.vmem %s1070_s3, %s786_s24  ;;  %234 = vst [vmem:[#allocation2 + $0x20] sm:$0xff] (!%p741_p7), %v920_v0  ;;  %235 = vst [vmem:[#allocation2 + $0x28] sm:$0xff] (!%p741_p7), %v920_v0 }
  0x16   : > { %s989_s8 = scalar_lea.vmem %s1067_s0, %s737_s29 }
  0x18 PF: > { %v829_v1 = vld [vmem:[%s979_s28 + $0x4] ss:$12 sps:$4 sm:$0xff]   ;;  %v921_v2 = vmov 0   ;;  %v831_v3 = vld [vmem:[%s979_s28 + $0x8] ss:$12 sps:$4 sm:$0xff]   ;;  %vm493_vm0 = vcmask 523264  }
  0x19   : > { %540 = vmatprep.subr.bf16.mxu1 %v921_v2  ;;  %497 = vmatprep.subr.bf16.mxu0 %v829_v1  ;;  %v832_v4 = vld [vmem:[%s979_s28] ss:$12 sps:$4 sm:$0xff]   ;;  %v833_v5 = vld [vmem:[%s979_s28 + $0x1c] ss:$12 sps:$4 sm:$0xff]   ;;  %v836_v7 = vld [vmem:[%s979_s28 + $0x18] ss:$12 sps:$4 sm:$0xff]  }
  0x1a   : > { %541 = vmatpush1.bf16.msra.mxu1 %v831_v3  ;;  %498 = vmatpush1.bf16.msra.mxu0 %v832_v4  ;;  %v835_v6 = vld [vmem:[%s979_s28 + $0x20] ss:$12 sps:$4 sm:$0xff]   ;;  %v839_v9 = vld [vmem:[%s979_s28 + $0x38] ss:$12 sps:$4 sm:$0xff]   ;;  %v840_v10 = vld [vmem:[%s979_s28 + $0x30] ss:$12 sps:$4 sm:$0xff]  }
  0x1b   : > { %542 = vmatprep.subr.bf16.mxu1 %v921_v2  ;;  %499 = vmatprep.subr.bf16.mxu0 %v833_v5  ;;  %v837_v8 = vld [vmem:[%s979_s28 + $0x34] ss:$12 sps:$4 sm:$0xff]   ;;  %v841_v11 = vld [vmem:[%s979_s28 + $0x4c] ss:$12 sps:$4 sm:$0xff]   ;;  %v843_v12 = vld [vmem:[%s979_s28 + $0x50] ss:$12 sps:$4 sm:$0xff]  }
  0x1c   : > { %v844_v13 = vld [vmem:[%s979_s28 + $0x48] ss:$12 sps:$4 sm:$0xff]   ;;  %v845_v14 = vld [vmem:[%s979_s28 + $0x64] ss:$12 sps:$4 sm:$0xff]   ;;  %v848_v16 = vld [vmem:[%s979_s28 + $0x60] ss:$12 sps:$4 sm:$0xff]  }
  0x1d   : > { %v847_v15 = vld [vmem:[%s979_s28 + $0x68] ss:$12 sps:$4 sm:$0xff]   ;;  %v851_v18 = vld [vmem:[%s979_s28 + $0x80] ss:$12 sps:$4 sm:$0xff]   ;;  %v852_v19 = vld [vmem:[%s979_s28 + $0x78] ss:$12 sps:$4 sm:$0xff]  }
  0x1e   : > { %543 = vmatpush1.bf16.msra.mxu1 %v835_v6  ;;  %500 = vmatpush1.bf16.msra.mxu0 %v836_v7  ;;  %v849_v17 = vld [vmem:[%s979_s28 + $0x7c] ss:$12 sps:$4 sm:$0xff]   ;;  %v853_v20 = vld [vmem:[%s979_s28 + $0x94] ss:$12 sps:$4 sm:$0xff]   ;;  %v855_v21 = vld [vmem:[%s979_s28 + $0x98] ss:$12 sps:$4 sm:$0xff]  }
  0x1f   : > { %544 = vmatprep.subr.bf16.mxu1 %v921_v2  ;;  %501 = vmatprep.subr.bf16.mxu0 %v837_v8  ;;  %v856_v22 = vld [vmem:[%s979_s28 + $0x90] ss:$12 sps:$4 sm:$0xff]   ;;  %v857_v23 = vld [vmem:[%s979_s28 + $0xac] ss:$12 sps:$4 sm:$0xff]   ;;  %v860_v25 = vld [vmem:[%s979_s28 + $0xa8] ss:$12 sps:$4 sm:$0xff]  }
  0x20   : > { %v859_v24 = vld [vmem:[%s979_s28 + $0xb0] ss:$12 sps:$4 sm:$0xff]   ;;  %v879_v27 = vld [vmem:[%s989_s8 + $0x4] ss:$8 sps:$4 sm:$0xff]   ;;  %v863_v28 = vld [vmem:[%s979_s28 + $0xc8] ss:$12 sps:$4 sm:$0xff]  }
  0x21   : > { %v861_v26 = vld [vmem:[%s979_s28 + $0xc4] ss:$12 sps:$4 sm:$0xff]   ;;  %781 = vmatprep.mubr.msk.bf16.mxu1 %vm493_vm0, %v879_v27  ;;  %v864_v29 = vld [vmem:[%s979_s28 + $0xc0] ss:$12 sps:$4 sm:$0xff]   ;;  %v865_v30 = vld [vmem:[%s979_s28 + $0xdc] ss:$12 sps:$4 sm:$0xff]   ;;  %780 = vmatprep.mubr.msk.bf16.mxu0 %vm493_vm0, %v879_v27 }
  0x22   : > { %545 = vmatpush1.bf16.msra.mxu1 %v839_v9  ;;  %502 = vmatpush1.bf16.msra.mxu0 %v840_v10  ;;  %v867_v31 = vld [vmem:[%s979_s28 + $0xe0] ss:$12 sps:$4 sm:$0xff]   ;;  %v868_v32 = vld [vmem:[%s979_s28 + $0xd8] ss:$12 sps:$4 sm:$0xff]   ;;  %v872_v35 = vld [vmem:[%s979_s28 + $0xf0] ss:$12 sps:$4 sm:$0xff]  }
  0x23   : > { %546 = vmatprep.subr.bf16.mxu1 %v921_v2  ;;  %503 = vmatprep.subr.bf16.mxu0 %v841_v11  ;;  %v869_v33 = vld [vmem:[%s979_s28 + $0xf4] ss:$12 sps:$4 sm:$0xff]   ;;  %v871_v34 = vld [vmem:[%s979_s28 + $0xf8] ss:$12 sps:$4 sm:$0xff]   ;;  %v875_v37 = vld [vmem:[%s979_s28 + $0x110] ss:$12 sps:$4 sm:$0xff]  }
  0x24   : > { %v873_v36 = vld [vmem:[%s979_s28 + $0x10c] ss:$12 sps:$4 sm:$0xff]   ;;  %v876_v38 = vld [vmem:[%s979_s28 + $0x108] ss:$12 sps:$4 sm:$0xff]   ;;  %v236_v41 = vld [vmem:[#allocation2] sm:$0xff]  ;;  %p782_p8 = scmp.ne.s32.totalorder %s902_s12, 8 }
  0x25   : > { %v877_v39 = vld [vmem:[%s989_s8] ss:$8 sps:$4 sm:$0xff]   ;;  %v238_v40 = vld [vmem:[#allocation2 + $0x10] sm:$0xff]  ;;  %v239_v48 = vld [vmem:[#allocation2 + $0x18] sm:$0xff]  ;;  %v605_v60 = vlaneseq (!%p782_p8) }
  0x26   : > { %547 = vmatpush1.bf16.msra.mxu1 %v843_v12  ;;  %504 = vmatpush1.bf16.msra.mxu0 %v844_v13  ;;  %v237_v43 = vld [vmem:[#allocation2 + $0x8] sm:$0xff]  ;;  %v240_v52 = vld [vmem:[#allocation2 + $0x20] sm:$0xff] }
  0x27   : > { %548 = vmatprep.subr.bf16.mxu1 %v921_v2  ;;  %505 = vmatprep.subr.bf16.mxu0 %v845_v14  ;;  %v241_v44 = vld [vmem:[#allocation2 + $0x28] sm:$0xff]  ;;  %v606_v61 = vshrl.u32 (!%p782_p8), %v605_v60, 7  ;;  %v603_v62 = vld [vmem:[%s1069_s2] sm:$0x7] (!%p782_p8) }
  0x29   : > { %v607_v0 = vsub.s32 (!%p782_p8), 0, %v606_v61  ;;  %v611_v1 = vsub.s32 (!%p782_p8), 1, %v606_v61 }
  0x2a   : > { %549 = vmatpush1.bf16.msra.mxu1 %v847_v15  ;;  %506 = vmatpush1.bf16.msra.mxu0 %v848_v16 }
  0x2b   : > { %550 = vmatprep.subr.bf16.mxu1 %v921_v2  ;;  %507 = vmatprep.subr.bf16.mxu0 %v849_v17  ;;  %v608_v6 = vrot.slane (!%p782_p8), %v603_v62, %v607_v0  ;;  %v612_v7 = vrot.slane (!%p782_p8), %v603_v62, %v611_v1 }
  0x2e   : > { %551 = vmatpush1.bf16.msra.mxu1 %v851_v18  ;;  %508 = vmatpush1.bf16.msra.mxu0 %v852_v19 }
  0x2f   : > { %552 = vmatprep.subr.bf16.mxu1 %v921_v2  ;;  %509 = vmatprep.subr.bf16.mxu0 %v853_v20 }
  0x32   : > { %553 = vmatpush1.bf16.msra.mxu1 %v855_v21  ;;  %510 = vmatpush1.bf16.msra.mxu0 %v856_v22 }
  0x33   : > { %554 = vmatprep.subr.bf16.mxu1 %v921_v2  ;;  %511 = vmatprep.subr.bf16.mxu0 %v857_v23 }
  0x36   : > { %555 = vmatpush1.bf16.msra.mxu1 %v859_v24  ;;  %512 = vmatpush1.bf16.msra.mxu0 %v860_v25 }
  0x37   : > { %556 = vmatprep.subr.bf16.mxu1 %v921_v2  ;;  %513 = vmatprep.subr.bf16.mxu0 %v861_v26 }
  0x3a   : > { %557 = vmatpush1.bf16.msra.mxu1 %v863_v28  ;;  %514 = vmatpush1.bf16.msra.mxu0 %v864_v29 }
  0x3b   : > { %558 = vmatprep.subr.bf16.mxu1 %v921_v2  ;;  %515 = vmatprep.subr.bf16.mxu0 %v865_v30 }
  0x3e   : > { %559 = vmatpush1.bf16.msra.mxu1 %v867_v31  ;;  %516 = vmatpush1.bf16.msra.mxu0 %v868_v32 }
  0x3f   : > { %560 = vmatprep.subr.bf16.mxu1 %v921_v2  ;;  %517 = vmatprep.subr.bf16.mxu0 %v869_v33 }
  0x42   : > { %561 = vmatpush1.bf16.msra.mxu1 %v871_v34  ;;  %518 = vmatpush1.bf16.msra.mxu0 %v872_v35 }
  0x43   : > { %562 = vmatprep.subr.bf16.mxu1 %v921_v2  ;;  %519 = vmatprep.subr.bf16.mxu0 %v873_v36  ;;  %v615_v2 = vsub.s32 (!%p782_p8), 2, %v606_v61 }
  0x45   : > { %v616_v8 = vrot.slane (!%p782_p8), %v603_v62, %v615_v2 }
  0x46   : > { %563 = vmatpush1.bf16.msra.mxu1 %v875_v37  ;;  %520 = vmatpush1.bf16.msra.mxu0 %v876_v38 }
  0x49   : > { %573 = vmatmul.mubr.bf16.vlgmr.msra.gmra.mrb[0].mxu1 %v877_v39  ;;  %530 = vmatmul.mubr.bf16.vlgmr.msra.gmra.mrb[0].mxu0 %v877_v39 }
 0x11c   : > { %v574_v42 = vpop.f32.mrb[0].mxu1  ;;  %v531_v46 = vpop.f32.mrb[0].mxu0  ;;  %596 = sbr.rel (%p782_p8) target bundleno = 303 (0x12f), region = 40 }
 0x11d   : > { %v583_v45 = vadd.f32 %v574_v42, %v238_v40  ;;  %v576_v47 = vpop.f32.mrb[1].mxu1  ;;  %v581_v49 = vadd.f32 %v531_v46, %v236_v41  ;;  %v533_v50 = vpop.f32.mrb[1].mxu0 }
 0x11e   : > { %v577_v51 = vpop.f32.mrb[2].mxu1  ;;  %v582_v53 = vadd.f32 %v533_v50, %v237_v43  ;;  %v535_v55 = vpop.f32.mrb[2].mxu0 }
 0x11f   : > { %589 = vst [vmem:[#allocation2 + $0x10] sm:$0xff] %v583_v45  ;;  %v586_v54 = vadd.f32 %v577_v51, %v241_v44  ;;  %v579_v56 = vpop.f32.mrb[3].mxu1  ;;  %587 = vst [vmem:[#allocation2] sm:$0xff] %v581_v49  ;;  %v584_v57 = vadd.f32 %v535_v55, %v239_v48  ;;  %v537_v58 = vpop.f32.mrb[3].mxu0 }
 0x120   : > { %588 = vst [vmem:[#allocation2 + $0x8] sm:$0xff] %v582_v53  ;;  %v585_v59 = vadd.f32 %v537_v58, %v240_v52 }
 0x121   : > { %592 = vst [vmem:[#allocation2 + $0x28] sm:$0xff] %v586_v54  ;;  %590 = vst [vmem:[#allocation2 + $0x18] sm:$0xff] %v584_v57 }
 0x122   : > { %591 = vst [vmem:[#allocation2 + $0x20] sm:$0xff] %v585_v59 }
 0x126   : > { %v597_v63 = vld [vmem:[#allocation2] sm:$0xff]  ;;  %v599_v4 = vld [vmem:[#allocation2 + $0x10] sm:$0xff] }
 0x127   : > { %v598_v3 = vld [vmem:[#allocation2 + $0x8] sm:$0xff]  ;;  %v620_v11 = vadd.f32 %v608_v6, %v597_v63  ;;  %v622_v13 = vadd.f32 %v616_v8, %v599_v4 }
 0x128   : > { %v600_v5 = vld [vmem:[#allocation2 + $0x18] sm:$0xff]  ;;  %v602_v10 = vld [vmem:[#allocation2 + $0x28] sm:$0xff]  ;;  %v621_v12 = vadd.f32 %v612_v7, %v598_v3 }
 0x129   : > { %v601_v9 = vld [vmem:[#allocation2 + $0x20] sm:$0xff]  ;;  %v623_v14 = vadd.f32 %v608_v6, %v600_v5  ;;  %v625_v16 = vadd.f32 %v616_v8, %v602_v10  ;;  %v626_v17 = vmax.f32 %v620_v11, 0.0  ;;  %v628_v19 = vmax.f32 %v622_v13, 0.0 }
 0x12a   : > { %v624_v15 = vadd.f32 %v612_v7, %v601_v9  ;;  %v627_v18 = vmax.f32 %v621_v12, 0.0 }
 0x12b   : > { %v629_v20 = vmax.f32 %v623_v14, 0.0  ;;  %v631_v22 = vmax.f32 %v625_v16, 0.0  ;;  %632 = vst [vmem:[%s984_s5] sm:$0xff] %v626_v17  ;;  %634 = vst [vmem:[%s984_s5 + $0x10] sm:$0xff] %v628_v19 }
 0x12c   : > { %v630_v21 = vmax.f32 %v624_v15, 0.0  ;;  %633 = vst [vmem:[%s984_s5 + $0x8] sm:$0xff] %v627_v18 }
 0x12d   : > { %635 = vst [vmem:[%s984_s5 + $0x18] sm:$0xff] %v629_v20  ;;  %637 = vst [vmem:[%s984_s5 + $0x28] sm:$0xff] %v631_v22 }
 0x12e   : > { %636 = vst [vmem:[%s984_s5 + $0x20] sm:$0xff] %v630_v21 }
 0x12f PF: > { %s13_s16 = sadd.s32 1, %s918_s16   ;;  %s1071_s12 = smov %s910_s14 }
 0x130   : > { %p10_p9 = scmp.ge.s32.totalorder %s13_s16, 20   ;;  %s1072_s13 = smov %s914_s15 }
 0x131   : > { %s1073_s14 = smov %s1076_s17  ;;  %s1074_s15 = smov %s1080_s18 }
 0x132   :  { %12 = sbr.rel (!%p10_p9) target bundleno = 3 (0x3), region = 73 }

</bundles_post_ra>
